<compile_context>
chip_gen: v6e
topology: v6e:2x2x1
jax: 0.10.0
libtpu: 0.0.40
codegen_flags: <defaults>
</compile_context>

<pallas_src>
import math

import jax
import jax.numpy as jnp
from jax.experimental import pallas as pl
from jax.experimental.pallas import tpu as pltpu

# ---- small synthetic config (real AST: hidden=768, 12 layers, 1214 tokens) --
PATCH = 8
F_STRIDE = 4
T_STRIDE = 4
HIDDEN = 32
N_HEADS = 4
HEAD_DIM = HIDDEN // N_HEADS
N_LAYERS = 2
INTERMEDIATE = 64
NUM_LABELS = 2
CLS_PAD = 128           # lane-dense classifier output width (sliced to NUM_LABELS outside)
LN_EPS = 1e-12

_USE_ERF_GELU = True    # resolved in __main__ by _erf_lowering_supported()


# ------------------------------ in-kernel math -------------------------------

def _ln(v, g, b):
    """Row-wise LayerNorm in f32; g/b are (1, D)."""
    mu = jnp.mean(v, axis=-1, keepdims=True)
    var = jnp.mean((v - mu) ** 2, axis=-1, keepdims=True)
    return (v - mu) * jax.lax.rsqrt(var + LN_EPS) * g + b


def _gelu(y):
    if _USE_ERF_GELU:
        # Exact (erf) GELU -- matches HF AST; erf/tanh ride the EUP slot.
        return 0.5 * y * (1.0 + jax.lax.erf(y * 0.7071067811865476))
    # TODO(synk): tanh-approx fallback used only if lax.erf has no Pallas TPU
    # lowering in this jax build (slightly deviates from HF AST's erf GELU).
    return 0.5 * y * (1.0 + jnp.tanh(0.7978845608028654 * (y + 0.044715 * y * y * y)))


def _erf_lowering_supported():
    """Probe once whether lax.erf lowers & runs inside a Pallas TPU kernel."""
    def _k(x_ref, o_ref):
        o_ref[...] = jax.lax.erf(x_ref[...])
    try:
        fn = pl.pallas_call(_k, out_shape=jax.ShapeDtypeStruct((8, 128), jnp.float32))
        jax.block_until_ready(jax.jit(fn)(jnp.zeros((8, 128), jnp.float32)))
        return True
    except Exception:
        return False


# ------------------------------ fused kernel ---------------------------------

def _fused_kernel(patches_ref, tokpos_ref, pw_ref, pb_ref,
                  ln1g_ref, ln1b_ref, wqkv_ref, bqkv_ref, wo_ref, bo_ref,
                  ln2g_ref, ln2b_ref, wi_ref, bi_ref, wo2_ref, bo2_ref,
                  lng_ref, lnb_ref, clsw_ref, clsb_ref,
                  logits_ref, h_scr):
    """Grid = (batch, layer). Residual stream h_scr (S, H) is VMEM-resident
    across the layer axis; HBM is touched only for the patch/weight inputs and
    the final (1, CLS_PAD) logits write."""
    l = pl.program_id(1)
    n_layers = pl.num_programs(1)

    # ---- layer 0: patch embedding + CLS/dist tokens + positional embedding --
    @pl.when(l == 0)
    def _():
        emb = jnp.dot(patches_ref[0].astype(jnp.bfloat16), pw_ref[...],
                      preferred_element_type=jnp.float32) + pb_ref[...]      # (S, H)
        # tok_pos already holds pos_emb plus (cls|dist)-patch_b on rows 0/1;
        # patch rows 0/1 are zero, so one add reconstructs
        # [cls; dist; patch_emb] + pos_emb exactly.
        h_scr[...] = emb + tokpos_ref[0]

    x = h_scr[...]                                          # (S, H) f32

    # ------------------------------ attention --------------------------------
    xn = _ln(x, ln1g_ref[0], ln1b_ref[0])
    qkv = jnp.dot(xn.astype(jnp.bfloat16), wqkv_ref[0],
                  preferred_element_type=jnp.float32) + bqkv_ref[0]          # (S, 3H)
    # Single 3-way split (static 32-wide slices); 1/sqrt(Dh) is pre-folded
    # into the Q projection weights, so no score scaling is needed here.
    q = qkv[:, :HIDDEN].astype(jnp.bfloat16)
    k = qkv[:, HIDDEN:2 * HIDDEN].astype(jnp.bfloat16)
    v = qkv[:, 2 * HIDDEN:].astype(jnp.bfloat16)
    wo = wo_ref[0]                                          # (H, H) bf16

    attn = None
    for hd in range(N_HEADS):                               # static unroll (4 heads)
        lo = hd * HEAD_DIM
        qh = q[:, lo:lo + HEAD_DIM]                         # (S, Dh) bf16
        kh = k[:, lo:lo + HEAD_DIM]
        vh = v[:, lo:lo + HEAD_DIM]
        s = jax.lax.dot_general(qh, kh, (((1,), (1,)), ((), ())),
                                preferred_element_type=jnp.float32)          # (S, S) f32
        s = s - jnp.max(s, axis=-1, keepdims=True)
        p = jnp.exp(s)
        p = p * pl.reciprocal(jnp.sum(p, axis=-1, keepdims=True), approx=True)
        ctx = jnp.dot(p.astype(jnp.bfloat16), vh,
                      preferred_element_type=jnp.float32)                    # (S, Dh)
        # Output projection accumulated per head: sum_h ctx_h @ Wo[h*Dh:(h+1)*Dh]
        part = jnp.dot(ctx.astype(jnp.bfloat16), wo[lo:lo + HEAD_DIM, :],
                       preferred_element_type=jnp.float32)                   # (S, H)
        attn = part if attn is None else attn + part

    h1 = x + attn + bo_ref[0]                               # residual 1

    # -------------------------------- MLP ------------------------------------
    yn = _ln(h1, ln2g_ref[0], ln2b_ref[0])
    mid = jnp.dot(yn.astype(jnp.bfloat16), wi_ref[0],
                  preferred_element_type=jnp.float32) + bi_ref[0]            # (S, I)
    mid = _gelu(mid)
    out = jnp.dot(mid.astype(jnp.bfloat16), wo2_ref[0],
                  preferred_element_type=jnp.float32) + bo2_ref[0]           # (S, H)
    h2 = h1 + out                                           # residual 2
    h_scr[...] = h2

    # ---- last layer: final LN on CLS + distillation tokens, pool, classify --
    @pl.when(l == n_layers - 1)
    def _():
        tok = _ln(h2[0:2, :], lng_ref[...], lnb_ref[...])   # (2, H)
        pooled = 0.5 * (tok[0:1, :] + tok[1:2, :])          # == ASTModel.pooler_output
        logits = jnp.dot(pooled.astype(jnp.bfloat16), clsw_ref[...],
                         preferred_element_type=jnp.float32) + clsb_ref[...]
        logits_ref[0] = logits.astype(logits_ref.dtype)


def _fused_forward(patches, tok_pos, params):
    """One pallas_call for the whole model.

    TODO(synk): for real-AST sizes (S~1214, H=768, I=3072) this monolithic layer
    must be re-tiled (flash-style query tiling for attention, S/I tiling for the
    MLP), weights single-buffered via pipeline_mode=pl.Buffered(1), and
    vmem_limit_bytes set explicitly -- the toy shapes here fit trivially.
    """
    B, S, P2 = patches.shape
    const2 = lambda r, c: pl.BlockSpec((r, c), lambda b, l: (0, 0))          # shared weights
    lmat = lambda r, c: pl.BlockSpec((1, r, c), lambda b, l: (l, 0, 0))      # per-layer weights

    return pl.pallas_call(
        _fused_kernel,
        out_shape=jax.ShapeDtypeStruct((B, 1, CLS_PAD), jnp.float32),
        grid=(B, N_LAYERS),
        in_specs=[
            pl.BlockSpec((1, S, P2), lambda b, l: (b, 0, 0)),      # patches (per-batch)
            pl.BlockSpec((1, S, HIDDEN), lambda b, l: (0, 0, 0)),  # tok_pos (constant)
            const2(P2, HIDDEN), const2(1, HIDDEN),                 # patch embedding
            lmat(1, HIDDEN), lmat(1, HIDDEN),                      # ln1 gamma/beta
            lmat(HIDDEN, 3 * HIDDEN), lmat(1, 3 * HIDDEN),         # fused QKV
            lmat(HIDDEN, HIDDEN), lmat(1, HIDDEN),                 # attention out proj
            lmat(1, HIDDEN), lmat(1, HIDDEN),                      # ln2 gamma/beta
            lmat(HIDDEN, INTERMEDIATE), lmat(1, INTERMEDIATE),     # MLP in
            lmat(INTERMEDIATE, HIDDEN), lmat(1, HIDDEN),           # MLP out
            const2(1, HIDDEN), const2(1, HIDDEN),                  # final LN
            const2(HIDDEN, CLS_PAD), const2(1, CLS_PAD),           # classifier
        ],
        out_specs=pl.BlockSpec((1, 1, CLS_PAD), lambda b, l: (b, 0, 0)),
        scratch_shapes=[pltpu.VMEM((S, HIDDEN), jnp.float32)],     # residual stream
        compiler_params=pltpu.CompilerParams(
            # batch -> megacore-parallel, layer -> sequential (carried scratch).
            # TODO(synk): on v7x with B==1 add a second parallel axis (S tiles).
            dimension_semantics=("parallel", "arbitrary")),
    )(patches, tok_pos, params["patch_w"], params["patch_b"],
      params["ln1_g"], params["ln1_b"], params["w_qkv"], params["b_qkv"],
      params["wo"], params["bo"], params["ln2_g"], params["ln2_b"],
      params["wi"], params["bi"], params["wo2"], params["bo2"],
      params["ln_g"], params["ln_b"], params["cls_w"], params["cls_b"])


# --------------------------------- glue --------------------------------------

def extract_patches(x):
    """im2col of the AST patch conv via one XLA op.  x:(B,T,F) -> (B, Np, PATCH*PATCH).

    Matches the Conv2d view: input is (B, 1, F, T) NCHW; patch flattening is
    row-major (freq-in-patch, time-in-patch); spatial flatten is freq-major,
    time-minor (same as Conv2d(...).flatten(2)). When porting real Conv2d
    weights into patch_w this channel ordering must be preserved.
    """
    B = x.shape[0]
    spec = jnp.transpose(x, (0, 2, 1))[:, None, :, :]      # (B, 1, F, T)
    p = jax.lax.conv_general_dilated_patches(
        spec, filter_shape=(PATCH, PATCH),
        window_strides=(F_STRIDE, T_STRIDE), padding="VALID")
    nf, nt = p.shape[2], p.shape[3]
    p = p.reshape(B, PATCH * PATCH, nf * nt)
    return jnp.transpose(p, (0, 2, 1)), nf * nt            # (B, Np, 64)


def ast_classifier_forward(params, x):
    """x: (B, time_frames, mel_bins) -> logits (B, NUM_LABELS)."""
    B = x.shape[0]
    patches, n_patches = extract_patches(x)                 # (B, Np, 64)
    S = n_patches + 2
    # Rows 0/1 reserved for CLS + distillation tokens: patch rows are zero
    # there, so the in-kernel patch matmul contributes only patch_b, which the
    # token/positional term below cancels exactly.
    patches = jnp.pad(patches, ((0, 0), (2, 0), (0, 0)))    # (B, S, 64)

    tok = jnp.concatenate([params["cls_token"], params["dist_token"]], axis=0)
    tok = tok - params["patch_b"]                           # cancel patch_b on token rows
    tok_pos = params["pos_emb"] + jnp.pad(tok, ((0, S - 2), (0, 0)))[None]   # (1, S, H)

    logits = _fused_forward(patches, tok_pos, params)       # (B, 1, CLS_PAD)
    return logits[:, 0, :NUM_LABELS]                        # self.classifier output


def init_params(key, seq_len):
    keys = iter(jax.random.split(key, 12))

    def nrm(shape, scale=0.02):
        return scale * jax.random.normal(next(keys), shape, jnp.float32)

    attn_scale = 1.0 / math.sqrt(HEAD_DIM)

    # classifier weight lane-padded to CLS_PAD columns (lane-dense output store)
    cls_w = jnp.zeros((HIDDEN, CLS_PAD), jnp.float32)
    cls_w = cls_w.at[:, :NUM_LABELS].set(nrm((HIDDEN, NUM_LABELS)))

    # fused QKV; 1/sqrt(head_dim) folded into the Q projection (weights + bias)
    w_qkv = nrm((N_LAYERS, HIDDEN, 3 * HIDDEN))
    w_qkv = w_qkv.at[:, :, :HIDDEN].multiply(attn_scale)
    b_qkv = jnp.zeros((N_LAYERS, 1, 3 * HIDDEN), jnp.float32)
    b_qkv = b_qkv.at[:, :, :HIDDEN].multiply(attn_scale)    # keeps folding correct if bias != 0

    return {
        "patch_w": nrm((PATCH * PATCH, HIDDEN)).astype(jnp.bfloat16),
        "patch_b": jnp.zeros((1, HIDDEN), jnp.float32),
        "cls_token": nrm((1, HIDDEN)),
        "dist_token": nrm((1, HIDDEN)),
        "pos_emb": nrm((1, seq_len, HIDDEN)),
        # per-layer weights stacked on a leading (N_LAYERS,) dim -> indexed by
        # the layer grid axis inside the single fused pallas_call.
        "ln1_g": jnp.ones((N_LAYERS, 1, HIDDEN), jnp.float32),
        "ln1_b": jnp.zeros((N_LAYERS, 1, HIDDEN), jnp.float32),
        "w_qkv": w_qkv.astype(jnp.bfloat16),
        "b_qkv": b_qkv,
        "wo": nrm((N_LAYERS, HIDDEN, HIDDEN)).astype(jnp.bfloat16),
        "bo": jnp.zeros((N_LAYERS, 1, HIDDEN), jnp.float32),
        "ln2_g": jnp.ones((N_LAYERS, 1, HIDDEN), jnp.float32),
        "ln2_b": jnp.zeros((N_LAYERS, 1, HIDDEN), jnp.float32),
        "wi": nrm((N_LAYERS, HIDDEN, INTERMEDIATE)).astype(jnp.bfloat16),
        "bi": jnp.zeros((N_LAYERS, 1, INTERMEDIATE), jnp.float32),
        "wo2": nrm((N_LAYERS, INTERMEDIATE, HIDDEN)).astype(jnp.bfloat16),
        "bo2": jnp.zeros((N_LAYERS, 1, HIDDEN), jnp.float32),
        # final LayerNorm + classifier head
        "ln_g": jnp.ones((1, HIDDEN), jnp.float32),
        "ln_b": jnp.zeros((1, HIDDEN), jnp.float32),
        "cls_w": cls_w.astype(jnp.bfloat16),
        "cls_b": jnp.zeros((1, CLS_PAD), jnp.float32),
    }


if __name__ == "__main__":
    B, T, Fm = 2, 32, 16                      # (batch, time_frames, mel_bins)
    nf = (Fm - PATCH) // F_STRIDE + 1
    nt = (T - PATCH) // T_STRIDE + 1
    seq_len = nf * nt + 2                     # patches + CLS + distillation tokens

    _USE_ERF_GELU = _erf_lowering_supported()  # HF AST uses erf GELU; prefer it

    key = jax.random.PRNGKey(0)
    pkey, xkey = jax.random.split(key)
    params = init_params(pkey, seq_len)
    x = jax.random.normal(xkey, (B, T, Fm), jnp.float32)

    fwd = jax.jit(ast_classifier_forward)
    logits = jax.block_until_ready(fwd(params, x))
    assert logits.shape == (B, NUM_LABELS)
    print("KERNEL_OK")
</pallas_src>

<mosaic_0001>
module attributes {stable_mosaic.version = 11 : i64} {
  func.func @_k(%arg0: memref<8x128xf32, #tpu.memory_space<vmem>>, %arg1: memref<8x128xf32, #tpu.memory_space<vmem>>) attributes {dimension_semantics = [], scalar_prefetch = 0 : i64, scratch_operands = 0 : i64, tpu.core_type = #tpu.core_type<tc>} {
    %c0 = arith.constant 0 : index
    %c0_0 = arith.constant 0 : index
    %0 = vector.load %arg0[%c0, %c0_0] : memref<8x128xf32, #tpu.memory_space<vmem>>, vector<8x128xf32>
    %1 = math.erf %0 : vector<8x128xf32>
    %c0_1 = arith.constant 0 : index
    %c0_2 = arith.constant 0 : index
    %2 = vector.load %arg1[%c0_1, %c0_2] : memref<8x128xf32, #tpu.memory_space<vmem>>, vector<8x128xf32>
    tpu.vector_store %arg1[%c0_1, %c0_2], %1 {strides = array<i32>} : memref<8x128xf32, #tpu.memory_space<vmem>>, vector<8x128xf32>,
    return
  }
}

module attributes {stable_mosaic.version = 11 : i64} {
  func.func @_fused_kernel(%arg0: i32, %arg1: i32, %arg2: memref<1x23x64xf32, #tpu.memory_space<vmem>>, %arg3: memref<1x23x32xf32, #tpu.memory_space<vmem>>, %arg4: memref<64x32xbf16, #tpu.memory_space<vmem>>, %arg5: memref<1x32xf32, #tpu.memory_space<vmem>>, %arg6: memref<1x1x32xf32, #tpu.memory_space<vmem>>, %arg7: memref<1x1x32xf32, #tpu.memory_space<vmem>>, %arg8: memref<1x32x96xbf16, #tpu.memory_space<vmem>>, %arg9: memref<1x1x96xf32, #tpu.memory_space<vmem>>, %arg10: memref<1x32x32xbf16, #tpu.memory_space<vmem>>, %arg11: memref<1x1x32xf32, #tpu.memory_space<vmem>>, %arg12: memref<1x1x32xf32, #tpu.memory_space<vmem>>, %arg13: memref<1x1x32xf32, #tpu.memory_space<vmem>>, %arg14: memref<1x32x64xbf16, #tpu.memory_space<vmem>>, %arg15: memref<1x1x64xf32, #tpu.memory_space<vmem>>, %arg16: memref<1x64x32xbf16, #tpu.memory_space<vmem>>, %arg17: memref<1x1x32xf32, #tpu.memory_space<vmem>>, %arg18: memref<1x32xf32, #tpu.memory_space<vmem>>, %arg19: memref<1x32xf32, #tpu.memory_space<vmem>>, %arg20: memref<32x128xbf16, #tpu.memory_space<vmem>>, %arg21: memref<1x128xf32, #tpu.memory_space<vmem>>, %arg22: memref<1x1x128xf32, #tpu.memory_space<vmem>>, %arg23: memref<23x32xf32, #tpu.memory_space<vmem>>) attributes {dimension_semantics = [#tpu.dimension_semantics<parallel>, #tpu.dimension_semantics<arbitrary>], iteration_bounds = array<i64: 2, 2>, scalar_prefetch = 0 : i64, scratch_operands = 1 : i64, tpu.core_type = #tpu.core_type<tc>, window_params = [{transform_indices = @transform_0, window_bounds = array<i64: 1, 23, 64>}, {pipeline_mode = #tpu.pipeline_mode<synchronous>, transform_indices = @transform_1, window_bounds = array<i64: 1, 23, 32>}, {pipeline_mode = #tpu.pipeline_mode<synchronous>, transform_indices = @transform_2, window_bounds = array<i64: 64, 32>}, {pipeline_mode = #tpu.pipeline_mode<synchronous>, transform_indices = @transform_3, window_bounds = array<i64: 1, 32>}, {transform_indices = @transform_4, window_bounds = array<i64: 1, 1, 32>}, {transform_indices = @transform_5, window_bounds = array<i64: 1, 1, 32>}, {transform_indices = @transform_6, window_bounds = array<i64: 1, 32, 96>}, {transform_indices = @transform_7, window_bounds = array<i64: 1, 1, 96>}, {transform_indices = @transform_8, window_bounds = array<i64: 1, 32, 32>}, {transform_indices = @transform_9, window_bounds = array<i64: 1, 1, 32>}, {transform_indices = @transform_10, window_bounds = array<i64: 1, 1, 32>}, {transform_indices = @transform_11, window_bounds = array<i64: 1, 1, 32>}, {transform_indices = @transform_12, window_bounds = array<i64: 1, 32, 64>}, {transform_indices = @transform_13, window_bounds = array<i64: 1, 1, 64>}, {transform_indices = @transform_14, window_bounds = array<i64: 1, 64, 32>}, {transform_indices = @transform_15, window_bounds = array<i64: 1, 1, 32>}, {pipeline_mode = #tpu.pipeline_mode<synchronous>, transform_indices = @transform_16, window_bounds = array<i64: 1, 32>}, {pipeline_mode = #tpu.pipeline_mode<synchronous>, transform_indices = @transform_17, window_bounds = array<i64: 1, 32>}, {pipeline_mode = #tpu.pipeline_mode<synchronous>, transform_indices = @transform_18, window_bounds = array<i64: 32, 128>}, {pipeline_mode = #tpu.pipeline_mode<synchronous>, transform_indices = @transform_19, window_bounds = array<i64: 1, 128>}, {transform_indices = @transform_20, window_bounds = array<i64: 1, 1, 128>}]} {
    %c0_i32 = arith.constant 0 : i32
    %0 = arith.cmpi eq, %arg1, %c0_i32 : i32
    %1 = arith.extui %0 : i1 to i32
    %c0_i32_0 = arith.constant 0 : i32
    %2 = arith.cmpi ne, %1, %c0_i32_0 : i32
    scf.if %2 {
      %c0_77 = arith.constant 0 : index
      %c0_78 = arith.constant 0 : index
      %c0_79 = arith.constant 0 : index
      %190 = vector.load %arg2[%c0_77, %c0_78, %c0_79] : memref<1x23x64xf32, #tpu.memory_space<vmem>>, vector<1x23x64xf32>
      %191 = vector.shape_cast %190 : vector<1x23x64xf32> to vector<23x64xf32>
      %192 = arith.truncf %191 : vector<23x64xf32> to vector<23x64xbf16>
      %c0_80 = arith.constant 0 : index
      %c0_81 = arith.constant 0 : index
      %193 = vector.load %arg4[%c0_80, %c0_81] : memref<64x32xbf16, #tpu.memory_space<vmem>>, vector<64x32xbf16>
      %cst_82 = arith.constant dense<0.000000e+00> : vector<23x32xf32>
      %194 = tpu.matmul %192, %193, %cst_82 {dimension_numbers = #tpu.dot_dimension_numbers<[1], [0], [0], [1], [0, 0, 1, 1], [], []>} : vector<23x64xbf16>, vector<64x32xbf16>, vector<23x32xf32> -> vector<23x32xf32>
      %c0_83 = arith.constant 0 : index
      %c0_84 = arith.constant 0 : index
      %195 = vector.load %arg5[%c0_83, %c0_84] : memref<1x32xf32, #tpu.memory_space<vmem>>, vector<1x32xf32>
      %196 = vector.broadcast %195 : vector<1x32xf32> to vector<23x32xf32>
      %197 = arith.addf %194, %196 : vector<23x32xf32>
      %c0_85 = arith.constant 0 : index
      %c0_86 = arith.constant 0 : index
      %c0_87 = arith.constant 0 : index
      %198 = vector.load %arg3[%c0_85, %c0_86, %c0_87] : memref<1x23x32xf32, #tpu.memory_space<vmem>>, vector<1x23x32xf32>
      %199 = vector.shape_cast %198 : vector<1x23x32xf32> to vector<23x32xf32>
      %200 = arith.addf %197, %199 : vector<23x32xf32>
      %c0_88 = arith.constant 0 : index
      %c0_89 = arith.constant 0 : index
      %201 = vector.load %arg23[%c0_88, %c0_89] : memref<23x32xf32, #tpu.memory_space<vmem>>, vector<23x32xf32>
      tpu.vector_store %arg23[%c0_88, %c0_89], %200 {strides = array<i32>} : memref<23x32xf32, #tpu.memory_space<vmem>>, vector<23x32xf32>,
    } else {
    }
    %c0 = arith.constant 0 : index
    %c0_1 = arith.constant 0 : index
    %3 = vector.load %arg23[%c0, %c0_1] : memref<23x32xf32, #tpu.memory_space<vmem>>, vector<23x32xf32>
    %c0_2 = arith.constant 0 : index
    %c0_3 = arith.constant 0 : index
    %c0_4 = arith.constant 0 : index
    %4 = vector.load %arg6[%c0_2, %c0_3, %c0_4] : memref<1x1x32xf32, #tpu.memory_space<vmem>>, vector<1x1x32xf32>
    %5 = vector.shape_cast %4 : vector<1x1x32xf32> to vector<1x32xf32>
    %c0_5 = arith.constant 0 : index
    %c0_6 = arith.constant 0 : index
    %c0_7 = arith.constant 0 : index
    %6 = vector.load %arg7[%c0_5, %c0_6, %c0_7] : memref<1x1x32xf32, #tpu.memory_space<vmem>>, vector<1x1x32xf32>
    %7 = vector.shape_cast %6 : vector<1x1x32xf32> to vector<1x32xf32>
    %cst = arith.constant dense<0.000000e+00> : vector<23xf32>
    %8 = vector.multi_reduction <add>, %3, %cst [1] : vector<23x32xf32> to vector<23xf32>
    %9 = vector.shape_cast %8 : vector<23xf32> to vector<23x1xf32>
    %cst_8 = arith.constant 3.200000e+01 : f32
    %10 = vector.broadcast %cst_8 : f32 to vector<23x1xf32>
    %11 = arith.divf %9, %10 : vector<23x1xf32>
    %12 = vector.broadcast %11 : vector<23x1xf32> to vector<23x32xf32>
    %13 = arith.subf %3, %12 : vector<23x32xf32>
    %14 = arith.mulf %13, %13 : vector<23x32xf32>
    %cst_9 = arith.constant dense<0.000000e+00> : vector<23xf32>
    %15 = vector.multi_reduction <add>, %14, %cst_9 [1] : vector<23x32xf32> to vector<23xf32>
    %16 = vector.shape_cast %15 : vector<23xf32> to vector<23x1xf32>
    %cst_10 = arith.constant 3.200000e+01 : f32
    %17 = vector.broadcast %cst_10 : f32 to vector<23x1xf32>
    %18 = arith.divf %16, %17 : vector<23x1xf32>
    %19 = vector.broadcast %11 : vector<23x1xf32> to vector<23x32xf32>
    %20 = arith.subf %3, %19 : vector<23x32xf32>
    %cst_11 = arith.constant 9.99999996E-13 : f32
    %21 = vector.broadcast %cst_11 : f32 to vector<23x1xf32>
    %22 = arith.addf %18, %21 : vector<23x1xf32>
    %23 = math.rsqrt %22 : vector<23x1xf32>
    %24 = vector.broadcast %23 : vector<23x1xf32> to vector<23x32xf32>
    %25 = arith.mulf %20, %24 : vector<23x32xf32>
    %26 = vector.broadcast %5 : vector<1x32xf32> to vector<23x32xf32>
    %27 = arith.mulf %25, %26 : vector<23x32xf32>
    %28 = vector.broadcast %7 : vector<1x32xf32> to vector<23x32xf32>
    %29 = arith.addf %27, %28 : vector<23x32xf32>
    %30 = arith.truncf %29 : vector<23x32xf32> to vector<23x32xbf16>
    %c0_12 = arith.constant 0 : index
    %c0_13 = arith.constant 0 : index
    %c0_14 = arith.constant 0 : index
    %31 = vector.load %arg8[%c0_12, %c0_13, %c0_14] : memref<1x32x96xbf16, #tpu.memory_space<vmem>>, vector<1x32x96xbf16>
    %32 = vector.shape_cast %31 : vector<1x32x96xbf16> to vector<32x96xbf16>
    %cst_15 = arith.constant dense<0.000000e+00> : vector<23x96xf32>
    %33 = tpu.matmul %30, %32, %cst_15 {dimension_numbers = #tpu.dot_dimension_numbers<[1], [0], [0], [1], [0, 0, 1, 1], [], []>} : vector<23x32xbf16>, vector<32x96xbf16>, vector<23x96xf32> -> vector<23x96xf32>
    %c0_16 = arith.constant 0 : index
    %c0_17 = arith.constant 0 : index
    %c0_18 = arith.constant 0 : index
    %34 = vector.load %arg9[%c0_16, %c0_17, %c0_18] : memref<1x1x96xf32, #tpu.memory_space<vmem>>, vector<1x1x96xf32>
    %35 = vector.shape_cast %34 : vector<1x1x96xf32> to vector<1x96xf32>
    %36 = vector.broadcast %35 : vector<1x96xf32> to vector<23x96xf32>
    %37 = arith.addf %33, %36 : vector<23x96xf32>
    %38 = vector.extract_strided_slice %37 {offsets = [0, 0], sizes = [23, 32], strides = [1, 1]} : vector<23x96xf32> to vector<23x32xf32>
    %39 = arith.truncf %38 : vector<23x32xf32> to vector<23x32xbf16>
    %40 = vector.extract_strided_slice %37 {offsets = [0, 32], sizes = [23, 32], strides = [1, 1]} : vector<23x96xf32> to vector<23x32xf32>
    %41 = arith.truncf %40 : vector<23x32xf32> to vector<23x32xbf16>
    %42 = vector.extract_strided_slice %37 {offsets = [0, 64], sizes = [23, 32], strides = [1, 1]} : vector<23x96xf32> to vector<23x32xf32>
    %43 = arith.truncf %42 : vector<23x32xf32> to vector<23x32xbf16>
    %c0_19 = arith.constant 0 : index
    %c0_20 = arith.constant 0 : index
    %c0_21 = arith.constant 0 : index
    %44 = vector.load %arg10[%c0_19, %c0_20, %c0_21] : memref<1x32x32xbf16, #tpu.memory_space<vmem>>, vector<1x32x32xbf16>
    %45 = vector.shape_cast %44 : vector<1x32x32xbf16> to vector<32x32xbf16>
    %46 = vector.extract_strided_slice %39 {offsets = [0, 0], sizes = [23, 8], strides = [1, 1]} : vector<23x32xbf16> to vector<23x8xbf16>
    %47 = vector.extract_strided_slice %41 {offsets = [0, 0], sizes = [23, 8], strides = [1, 1]} : vector<23x32xbf16> to vector<23x8xbf16>
    %48 = vector.extract_strided_slice %43 {offsets = [0, 0], sizes = [23, 8], strides = [1, 1]} : vector<23x32xbf16> to vector<23x8xbf16>
    %cst_22 = arith.constant dense<0.000000e+00> : vector<23x23xf32>
    %49 = tpu.matmul %46, %47, %cst_22 {dimension_numbers = #tpu.dot_dimension_numbers<[1], [1], [0], [0], [0, 0, 1, 0], [], []>} : vector<23x8xbf16>, vector<23x8xbf16>, vector<23x23xf32> -> vector<23x23xf32>
    %cst_23 = arith.constant dense<0xFF800000> : vector<23xf32>
    %50 = vector.multi_reduction <maximumf>, %49, %cst_23 [1] : vector<23x23xf32> to vector<23xf32>
    %51 = vector.shape_cast %50 : vector<23xf32> to vector<23x1xf32>
    %52 = vector.broadcast %51 : vector<23x1xf32> to vector<23x23xf32>
    %53 = arith.subf %49, %52 : vector<23x23xf32>
    %54 = math.exp %53 : vector<23x23xf32>
    %cst_24 = arith.constant dense<0.000000e+00> : vector<23xf32>
    %55 = vector.multi_reduction <add>, %54, %cst_24 [1] : vector<23x23xf32> to vector<23xf32>
    %56 = vector.shape_cast %55 : vector<23xf32> to vector<23x1xf32>
    %57 = tpu.reciprocal %56 {approx = true} : vector<23x1xf32> -> vector<23x1xf32>
    %58 = vector.broadcast %57 : vector<23x1xf32> to vector<23x23xf32>
    %59 = arith.mulf %54, %58 : vector<23x23xf32>
    %60 = arith.truncf %59 : vector<23x23xf32> to vector<23x23xbf16>
    %cst_25 = arith.constant dense<0.000000e+00> : vector<23x8xf32>
    %61 = tpu.matmul %60, %48, %cst_25 {dimension_numbers = #tpu.dot_dimension_numbers<[1], [0], [0], [1], [0, 0, 1, 1], [], []>} : vector<23x23xbf16>, vector<23x8xbf16>, vector<23x8xf32> -> vector<23x8xf32>
    %62 = arith.truncf %61 : vector<23x8xf32> to vector<23x8xbf16>
    %63 = vector.extract_strided_slice %45 {offsets = [0, 0], sizes = [8, 32], strides = [1, 1]} : vector<32x32xbf16> to vector<8x32xbf16>
    %cst_26 = arith.constant dense<0.000000e+00> : vector<23x32xf32>
    %64 = tpu.matmul %62, %63, %cst_26 {dimension_numbers = #tpu.dot_dimension_numbers<[1], [0], [0], [1], [0, 0, 1, 1], [], []>} : vector<23x8xbf16>, vector<8x32xbf16>, vector<23x32xf32> -> vector<23x32xf32>
    %65 = vector.extract_strided_slice %39 {offsets = [0, 8], sizes = [23, 8], strides = [1, 1]} : vector<23x32xbf16> to vector<23x8xbf16>
    %66 = vector.extract_strided_slice %41 {offsets = [0, 8], sizes = [23, 8], strides = [1, 1]} : vector<23x32xbf16> to vector<23x8xbf16>
    %67 = vector.extract_strided_slice %43 {offsets = [0, 8], sizes = [23, 8], strides = [1, 1]} : vector<23x32xbf16> to vector<23x8xbf16>
    %cst_27 = arith.constant dense<0.000000e+00> : vector<23x23xf32>
    %68 = tpu.matmul %65, %66, %cst_27 {dimension_numbers = #tpu.dot_dimension_numbers<[1], [1], [0], [0], [0, 0, 1, 0], [], []>} : vector<23x8xbf16>, vector<23x8xbf16>, vector<23x23xf32> -> vector<23x23xf32>
    %cst_28 = arith.constant dense<0xFF800000> : vector<23xf32>
    %69 = vector.multi_reduction <maximumf>, %68, %cst_28 [1] : vector<23x23xf32> to vector<23xf32>
    %70 = vector.shape_cast %69 : vector<23xf32> to vector<23x1xf32>
    %71 = vector.broadcast %70 : vector<23x1xf32> to vector<23x23xf32>
    %72 = arith.subf %68, %71 : vector<23x23xf32>
    %73 = math.exp %72 : vector<23x23xf32>
    %cst_29 = arith.constant dense<0.000000e+00> : vector<23xf32>
    %74 = vector.multi_reduction <add>, %73, %cst_29 [1] : vector<23x23xf32> to vector<23xf32>
    %75 = vector.shape_cast %74 : vector<23xf32> to vector<23x1xf32>
    %76 = tpu.reciprocal %75 {approx = true} : vector<23x1xf32> -> vector<23x1xf32>
    %77 = vector.broadcast %76 : vector<23x1xf32> to vector<23x23xf32>
    %78 = arith.mulf %73, %77 : vector<23x23xf32>
    %79 = arith.truncf %78 : vector<23x23xf32> to vector<23x23xbf16>
    %cst_30 = arith.constant dense<0.000000e+00> : vector<23x8xf32>
    %80 = tpu.matmul %79, %67, %cst_30 {dimension_numbers = #tpu.dot_dimension_numbers<[1], [0], [0], [1], [0, 0, 1, 1], [], []>} : vector<23x23xbf16>, vector<23x8xbf16>, vector<23x8xf32> -> vector<23x8xf32>
    %81 = arith.truncf %80 : vector<23x8xf32> to vector<23x8xbf16>
    %82 = vector.extract_strided_slice %45 {offsets = [8, 0], sizes = [8, 32], strides = [1, 1]} : vector<32x32xbf16> to vector<8x32xbf16>
    %cst_31 = arith.constant dense<0.000000e+00> : vector<23x32xf32>
    %83 = tpu.matmul %81, %82, %cst_31 {dimension_numbers = #tpu.dot_dimension_numbers<[1], [0], [0], [1], [0, 0, 1, 1], [], []>} : vector<23x8xbf16>, vector<8x32xbf16>, vector<23x32xf32> -> vector<23x32xf32>
    %84 = arith.addf %64, %83 : vector<23x32xf32>
    %85 = vector.extract_strided_slice %39 {offsets = [0, 16], sizes = [23, 8], strides = [1, 1]} : vector<23x32xbf16> to vector<23x8xbf16>
    %86 = vector.extract_strided_slice %41 {offsets = [0, 16], sizes = [23, 8], strides = [1, 1]} : vector<23x32xbf16> to vector<23x8xbf16>
    %87 = vector.extract_strided_slice %43 {offsets = [0, 16], sizes = [23, 8], strides = [1, 1]} : vector<23x32xbf16> to vector<23x8xbf16>
    %cst_32 = arith.constant dense<0.000000e+00> : vector<23x23xf32>
    %88 = tpu.matmul %85, %86, %cst_32 {dimension_numbers = #tpu.dot_dimension_numbers<[1], [1], [0], [0], [0, 0, 1, 0], [], []>} : vector<23x8xbf16>, vector<23x8xbf16>, vector<23x23xf32> -> vector<23x23xf32>
    %cst_33 = arith.constant dense<0xFF800000> : vector<23xf32>
    %89 = vector.multi_reduction <maximumf>, %88, %cst_33 [1] : vector<23x23xf32> to vector<23xf32>
    %90 = vector.shape_cast %89 : vector<23xf32> to vector<23x1xf32>
    %91 = vector.broadcast %90 : vector<23x1xf32> to vector<23x23xf32>
    %92 = arith.subf %88, %91 : vector<23x23xf32>
    %93 = math.exp %92 : vector<23x23xf32>
    %cst_34 = arith.constant dense<0.000000e+00> : vector<23xf32>
    %94 = vector.multi_reduction <add>, %93, %cst_34 [1] : vector<23x23xf32> to vector<23xf32>
    %95 = vector.shape_cast %94 : vector<23xf32> to vector<23x1xf32>
    %96 = tpu.reciprocal %95 {approx = true} : vector<23x1xf32> -> vector<23x1xf32>
    %97 = vector.broadcast %96 : vector<23x1xf32> to vector<23x23xf32>
    %98 = arith.mulf %93, %97 : vector<23x23xf32>
    %99 = arith.truncf %98 : vector<23x23xf32> to vector<23x23xbf16>
    %cst_35 = arith.constant dense<0.000000e+00> : vector<23x8xf32>
    %100 = tpu.matmul %99, %87, %cst_35 {dimension_numbers = #tpu.dot_dimension_numbers<[1], [0], [0], [1], [0, 0, 1, 1], [], []>} : vector<23x23xbf16>, vector<23x8xbf16>, vector<23x8xf32> -> vector<23x8xf32>
    %101 = arith.truncf %100 : vector<23x8xf32> to vector<23x8xbf16>
    %102 = vector.extract_strided_slice %45 {offsets = [16, 0], sizes = [8, 32], strides = [1, 1]} : vector<32x32xbf16> to vector<8x32xbf16>
    %cst_36 = arith.constant dense<0.000000e+00> : vector<23x32xf32>
    %103 = tpu.matmul %101, %102, %cst_36 {dimension_numbers = #tpu.dot_dimension_numbers<[1], [0], [0], [1], [0, 0, 1, 1], [], []>} : vector<23x8xbf16>, vector<8x32xbf16>, vector<23x32xf32> -> vector<23x32xf32>
    %104 = arith.addf %84, %103 : vector<23x32xf32>
    %105 = vector.extract_strided_slice %39 {offsets = [0, 24], sizes = [23, 8], strides = [1, 1]} : vector<23x32xbf16> to vector<23x8xbf16>
    %106 = vector.extract_strided_slice %41 {offsets = [0, 24], sizes = [23, 8], strides = [1, 1]} : vector<23x32xbf16> to vector<23x8xbf16>
    %107 = vector.extract_strided_slice %43 {offsets = [0, 24], sizes = [23, 8], strides = [1, 1]} : vector<23x32xbf16> to vector<23x8xbf16>
    %cst_37 = arith.constant dense<0.000000e+00> : vector<23x23xf32>
    %108 = tpu.matmul %105, %106, %cst_37 {dimension_numbers = #tpu.dot_dimension_numbers<[1], [1], [0], [0], [0, 0, 1, 0], [], []>} : vector<23x8xbf16>, vector<23x8xbf16>, vector<23x23xf32> -> vector<23x23xf32>
    %cst_38 = arith.constant dense<0xFF800000> : vector<23xf32>
    %109 = vector.multi_reduction <maximumf>, %108, %cst_38 [1] : vector<23x23xf32> to vector<23xf32>
    %110 = vector.shape_cast %109 : vector<23xf32> to vector<23x1xf32>
    %111 = vector.broadcast %110 : vector<23x1xf32> to vector<23x23xf32>
    %112 = arith.subf %108, %111 : vector<23x23xf32>
    %113 = math.exp %112 : vector<23x23xf32>
    %cst_39 = arith.constant dense<0.000000e+00> : vector<23xf32>
    %114 = vector.multi_reduction <add>, %113, %cst_39 [1] : vector<23x23xf32> to vector<23xf32>
    %115 = vector.shape_cast %114 : vector<23xf32> to vector<23x1xf32>
    %116 = tpu.reciprocal %115 {approx = true} : vector<23x1xf32> -> vector<23x1xf32>
    %117 = vector.broadcast %116 : vector<23x1xf32> to vector<23x23xf32>
    %118 = arith.mulf %113, %117 : vector<23x23xf32>
    %119 = arith.truncf %118 : vector<23x23xf32> to vector<23x23xbf16>
    %cst_40 = arith.constant dense<0.000000e+00> : vector<23x8xf32>
    %120 = tpu.matmul %119, %107, %cst_40 {dimension_numbers = #tpu.dot_dimension_numbers<[1], [0], [0], [1], [0, 0, 1, 1], [], []>} : vector<23x23xbf16>, vector<23x8xbf16>, vector<23x8xf32> -> vector<23x8xf32>
    %121 = arith.truncf %120 : vector<23x8xf32> to vector<23x8xbf16>
    %122 = vector.extract_strided_slice %45 {offsets = [24, 0], sizes = [8, 32], strides = [1, 1]} : vector<32x32xbf16> to vector<8x32xbf16>
    %cst_41 = arith.constant dense<0.000000e+00> : vector<23x32xf32>
    %123 = tpu.matmul %121, %122, %cst_41 {dimension_numbers = #tpu.dot_dimension_numbers<[1], [0], [0], [1], [0, 0, 1, 1], [], []>} : vector<23x8xbf16>, vector<8x32xbf16>, vector<23x32xf32> -> vector<23x32xf32>
    %124 = arith.addf %104, %123 : vector<23x32xf32>
    %125 = arith.addf %3, %124 : vector<23x32xf32>
    %c0_42 = arith.constant 0 : index
    %c0_43 = arith.constant 0 : index
    %c0_44 = arith.constant 0 : index
    %126 = vector.load %arg11[%c0_42, %c0_43, %c0_44] : memref<1x1x32xf32, #tpu.memory_space<vmem>>, vector<1x1x32xf32>
    %127 = vector.shape_cast %126 : vector<1x1x32xf32> to vector<1x32xf32>
    %128 = vector.broadcast %127 : vector<1x32xf32> to vector<23x32xf32>
    %129 = arith.addf %125, %128 : vector<23x32xf32>
    %c0_45 = arith.constant 0 : index
    %c0_46 = arith.constant 0 : index
    %c0_47 = arith.constant 0 : index
    %130 = vector.load %arg12[%c0_45, %c0_46, %c0_47] : memref<1x1x32xf32, #tpu.memory_space<vmem>>, vector<1x1x32xf32>
    %131 = vector.shape_cast %130 : vector<1x1x32xf32> to vector<1x32xf32>
    %c0_48 = arith.constant 0 : index
    %c0_49 = arith.constant 0 : index
    %c0_50 = arith.constant 0 : index
    %132 = vector.load %arg13[%c0_48, %c0_49, %c0_50] : memref<1x1x32xf32, #tpu.memory_space<vmem>>, vector<1x1x32xf32>
    %133 = vector.shape_cast %132 : vector<1x1x32xf32> to vector<1x32xf32>
    %cst_51 = arith.constant dense<0.000000e+00> : vector<23xf32>
    %134 = vector.multi_reduction <add>, %129, %cst_51 [1] : vector<23x32xf32> to vector<23xf32>
    %135 = vector.shape_cast %134 : vector<23xf32> to vector<23x1xf32>
    %cst_52 = arith.constant 3.200000e+01 : f32
    %136 = vector.broadcast %cst_52 : f32 to vector<23x1xf32>
    %137 = arith.divf %135, %136 : vector<23x1xf32>
    %138 = vector.broadcast %137 : vector<23x1xf32> to vector<23x32xf32>
    %139 = arith.subf %129, %138 : vector<23x32xf32>
    %140 = arith.mulf %139, %139 : vector<23x32xf32>
    %cst_53 = arith.constant dense<0.000000e+00> : vector<23xf32>
    %141 = vector.multi_reduction <add>, %140, %cst_53 [1] : vector<23x32xf32> to vector<23xf32>
    %142 = vector.shape_cast %141 : vector<23xf32> to vector<23x1xf32>
    %cst_54 = arith.constant 3.200000e+01 : f32
    %143 = vector.broadcast %cst_54 : f32 to vector<23x1xf32>
    %144 = arith.divf %142, %143 : vector<23x1xf32>
    %145 = vector.broadcast %137 : vector<23x1xf32> to vector<23x32xf32>
    %146 = arith.subf %129, %145 : vector<23x32xf32>
    %cst_55 = arith.constant 9.99999996E-13 : f32
    %147 = vector.broadcast %cst_55 : f32 to vector<23x1xf32>
    %148 = arith.addf %144, %147 : vector<23x1xf32>
    %149 = math.rsqrt %148 : vector<23x1xf32>
    %150 = vector.broadcast %149 : vector<23x1xf32> to vector<23x32xf32>
    %151 = arith.mulf %146, %150 : vector<23x32xf32>
    %152 = vector.broadcast %131 : vector<1x32xf32> to vector<23x32xf32>
    %153 = arith.mulf %151, %152 : vector<23x32xf32>
    %154 = vector.broadcast %133 : vector<1x32xf32> to vector<23x32xf32>
    %155 = arith.addf %153, %154 : vector<23x32xf32>
    %156 = arith.truncf %155 : vector<23x32xf32> to vector<23x32xbf16>
    %c0_56 = arith.constant 0 : index
    %c0_57 = arith.constant 0 : index
    %c0_58 = arith.constant 0 : index
    %157 = vector.load %arg14[%c0_56, %c0_57, %c0_58] : memref<1x32x64xbf16, #tpu.memory_space<vmem>>, vector<1x32x64xbf16>
    %158 = vector.shape_cast %157 : vector<1x32x64xbf16> to vector<32x64xbf16>
    %cst_59 = arith.constant dense<0.000000e+00> : vector<23x64xf32>
    %159 = tpu.matmul %156, %158, %cst_59 {dimension_numbers = #tpu.dot_dimension_numbers<[1], [0], [0], [1], [0, 0, 1, 1], [], []>} : vector<23x32xbf16>, vector<32x64xbf16>, vector<23x64xf32> -> vector<23x64xf32>
    %c0_60 = arith.constant 0 : index
    %c0_61 = arith.constant 0 : index
    %c0_62 = arith.constant 0 : index
    %160 = vector.load %arg15[%c0_60, %c0_61, %c0_62] : memref<1x1x64xf32, #tpu.memory_space<vmem>>, vector<1x1x64xf32>
    %161 = vector.shape_cast %160 : vector<1x1x64xf32> to vector<1x64xf32>
    %162 = vector.broadcast %161 : vector<1x64xf32> to vector<23x64xf32>
    %163 = arith.addf %159, %162 : vector<23x64xf32>
    %cst_63 = arith.constant 5.000000e-01 : f32
    %164 = vector.broadcast %cst_63 : f32 to vector<23x64xf32>
    %165 = arith.mulf %164, %163 : vector<23x64xf32>
    %cst_64 = arith.constant 4.471500e-02 : f32
    %166 = vector.broadcast %cst_64 : f32 to vector<23x64xf32>
    %167 = arith.mulf %166, %163 : vector<23x64xf32>
    %168 = arith.mulf %167, %163 : vector<23x64xf32>
    %169 = arith.mulf %168, %163 : vector<23x64xf32>
    %170 = arith.addf %163, %169 : vector<23x64xf32>
    %cst_65 = arith.constant 0.797884583 : f32
    %171 = vector.broadcast %cst_65 : f32 to vector<23x64xf32>
    %172 = arith.mulf %171, %170 : vector<23x64xf32>
    %173 = math.tanh %172 : vector<23x64xf32>
    %cst_66 = arith.constant 1.000000e+00 : f32
    %174 = vector.broadcast %cst_66 : f32 to vector<23x64xf32>
    %175 = arith.addf %174, %173 : vector<23x64xf32>
    %176 = arith.mulf %165, %175 : vector<23x64xf32>
    %177 = arith.truncf %176 : vector<23x64xf32> to vector<23x64xbf16>
    %c0_67 = arith.constant 0 : index
    %c0_68 = arith.constant 0 : index
    %c0_69 = arith.constant 0 : index
    %178 = vector.load %arg16[%c0_67, %c0_68, %c0_69] : memref<1x64x32xbf16, #tpu.memory_space<vmem>>, vector<1x64x32xbf16>
    %179 = vector.shape_cast %178 : vector<1x64x32xbf16> to vector<64x32xbf16>
    %cst_70 = arith.constant dense<0.000000e+00> : vector<23x32xf32>
    %180 = tpu.matmul %177, %179, %cst_70 {dimension_numbers = #tpu.dot_dimension_numbers<[1], [0], [0], [1], [0, 0, 1, 1], [], []>} : vector<23x64xbf16>, vector<64x32xbf16>, vector<23x32xf32> -> vector<23x32xf32>
    %c0_71 = arith.constant 0 : index
    %c0_72 = arith.constant 0 : index
    %c0_73 = arith.constant 0 : index
    %181 = vector.load %arg17[%c0_71, %c0_72, %c0_73] : memref<1x1x32xf32, #tpu.memory_space<vmem>>, vector<1x1x32xf32>
    %182 = vector.shape_cast %181 : vector<1x1x32xf32> to vector<1x32xf32>
    %183 = vector.broadcast %182 : vector<1x32xf32> to vector<23x32xf32>
    %184 = arith.addf %180, %183 : vector<23x32xf32>
    %185 = arith.addf %129, %184 : vector<23x32xf32>
    %c0_74 = arith.constant 0 : index
    %c0_75 = arith.constant 0 : index
    %186 = vector.load %arg23[%c0_74, %c0_75] : memref<23x32xf32, #tpu.memory_space<vmem>>, vector<23x32xf32>
    tpu.vector_store %arg23[%c0_74, %c0_75], %185 {strides = array<i32>} : memref<23x32xf32, #tpu.memory_space<vmem>>, vector<23x32xf32>,
    %c1_i32 = arith.constant 1 : i32
    %187 = arith.cmpi eq, %arg1, %c1_i32 : i32
    %188 = arith.extui %187 : i1 to i32
    %c0_i32_76 = arith.constant 0 : i32
    %189 = arith.cmpi ne, %188, %c0_i32_76 : i32
    scf.if %189 {
      %190 = vector.extract_strided_slice %185 {offsets = [0, 0], sizes = [2, 32], strides = [1, 1]} : vector<23x32xf32> to vector<2x32xf32>
      %c0_77 = arith.constant 0 : index
      %c0_78 = arith.constant 0 : index
      %191 = vector.load %arg18[%c0_77, %c0_78] : memref<1x32xf32, #tpu.memory_space<vmem>>, vector<1x32xf32>
      %c0_79 = arith.constant 0 : index
      %c0_80 = arith.constant 0 : index
      %192 = vector.load %arg19[%c0_79, %c0_80] : memref<1x32xf32, #tpu.memory_space<vmem>>, vector<1x32xf32>
      %cst_81 = arith.constant dense<0.000000e+00> : vector<2xf32>
      %193 = vector.multi_reduction <add>, %190, %cst_81 [1] : vector<2x32xf32> to vector<2xf32>
      %194 = vector.shape_cast %193 : vector<2xf32> to vector<2x1xf32>
      %cst_82 = arith.constant 3.200000e+01 : f32
      %195 = vector.broadcast %cst_82 : f32 to vector<2x1xf32>
      %196 = arith.divf %194, %195 : vector<2x1xf32>
      %197 = vector.broadcast %196 : vector<2x1xf32> to vector<2x32xf32>
      %198 = arith.subf %190, %197 : vector<2x32xf32>
      %199 = arith.mulf %198, %198 : vector<2x32xf32>
      %cst_83 = arith.constant dense<0.000000e+00> : vector<2xf32>
      %200 = vector.multi_reduction <add>, %199, %cst_83 [1] : vector<2x32xf32> to vector<2xf32>
      %201 = vector.shape_cast %200 : vector<2xf32> to vector<2x1xf32>
      %cst_84 = arith.constant 3.200000e+01 : f32
      %202 = vector.broadcast %cst_84 : f32 to vector<2x1xf32>
      %203 = arith.divf %201, %202 : vector<2x1xf32>
      %204 = vector.broadcast %196 : vector<2x1xf32> to vector<2x32xf32>
      %205 = arith.subf %190, %204 : vector<2x32xf32>
      %cst_85 = arith.constant 9.99999996E-13 : f32
      %206 = vector.broadcast %cst_85 : f32 to vector<2x1xf32>
      %207 = arith.addf %203, %206 : vector<2x1xf32>
      %208 = math.rsqrt %207 : vector<2x1xf32>
      %209 = vector.broadcast %208 : vector<2x1xf32> to vector<2x32xf32>
      %210 = arith.mulf %205, %209 : vector<2x32xf32>
      %211 = vector.broadcast %191 : vector<1x32xf32> to vector<2x32xf32>
      %212 = arith.mulf %210, %211 : vector<2x32xf32>
      %213 = vector.broadcast %192 : vector<1x32xf32> to vector<2x32xf32>
      %214 = arith.addf %212, %213 : vector<2x32xf32>
      %215 = vector.extract_strided_slice %214 {offsets = [0, 0], sizes = [1, 32], strides = [1, 1]} : vector<2x32xf32> to vector<1x32xf32>
      %216 = vector.extract_strided_slice %214 {offsets = [1, 0], sizes = [1, 32], strides = [1, 1]} : vector<2x32xf32> to vector<1x32xf32>
      %217 = arith.addf %215, %216 : vector<1x32xf32>
      %cst_86 = arith.constant 5.000000e-01 : f32
      %218 = vector.broadcast %cst_86 : f32 to vector<1x32xf32>
      %219 = arith.mulf %218, %217 : vector<1x32xf32>
      %220 = arith.truncf %219 : vector<1x32xf32> to vector<1x32xbf16>
      %c0_87 = arith.constant 0 : index
      %c0_88 = arith.constant 0 : index
      %221 = vector.load %arg20[%c0_87, %c0_88] : memref<32x128xbf16, #tpu.memory_space<vmem>>, vector<32x128xbf16>
      %cst_89 = arith.constant dense<0.000000e+00> : vector<1x128xf32>
      %222 = tpu.matmul %220, %221, %cst_89 {dimension_numbers = #tpu.dot_dimension_numbers<[1], [0], [0], [1], [0, 0, 1, 1], [], []>} : vector<1x32xbf16>, vector<32x128xbf16>, vector<1x128xf32> -> vector<1x128xf32>
      %c0_90 = arith.constant 0 : index
      %c0_91 = arith.constant 0 : index
      %223 = vector.load %arg21[%c0_90, %c0_91] : memref<1x128xf32, #tpu.memory_space<vmem>>, vector<1x128xf32>
      %224 = arith.addf %222, %223 : vector<1x128xf32>
      %c0_92 = arith.constant 0 : index
      %c0_93 = arith.constant 0 : index
      %c0_94 = arith.constant 0 : index
      %225 = vector.load %arg22[%c0_92, %c0_93, %c0_94] : memref<1x1x128xf32, #tpu.memory_space<vmem>>, vector<1x1x128xf32>
      %226 = vector.shape_cast %225 : vector<1x1x128xf32> to vector<1x128xf32>
      %227 = vector.shape_cast %224 : vector<1x128xf32> to vector<1x1x128xf32>
      tpu.vector_store %arg22[%c0_92, %c0_93, %c0_94], %227 {strides = array<i32>} : memref<1x1x128xf32, #tpu.memory_space<vmem>>, vector<1x1x128xf32>,
    } else {
    }
    return
  }
  func.func @transform_0(%arg0: i32, %arg1: i32) -> (i32, i32, i32) {
    %c0_i32 = arith.constant 0 : i32
    %c0_i32_0 = arith.constant 0 : i32
    %c0_i32_1 = arith.constant 0 : i32
    return %arg0, %c0_i32, %c0_i32_0 : i32, i32, i32
  }
  func.func @transform_1(%arg0: i32, %arg1: i32) -> (i32, i32, i32) {
    %c0_i32 = arith.constant 0 : i32
    %c0_i32_0 = arith.constant 0 : i32
    %c0_i32_1 = arith.constant 0 : i32
    %c0_i32_2 = arith.constant 0 : i32
    return %c0_i32, %c0_i32_0, %c0_i32_1 : i32, i32, i32
  }
  func.func @transform_2(%arg0: i32, %arg1: i32) -> (i32, i32) {
    %c0_i32 = arith.constant 0 : i32
    %c0_i32_0 = arith.constant 0 : i32
    %c0_i32_1 = arith.constant 0 : i32
    return %c0_i32, %c0_i32_0 : i32, i32
  }
  func.func @transform_3(%arg0: i32, %arg1: i32) -> (i32, i32) {
    %c0_i32 = arith.constant 0 : i32
    %c0_i32_0 = arith.constant 0 : i32
    %c0_i32_1 = arith.constant 0 : i32
    return %c0_i32, %c0_i32_0 : i32, i32
  }
  func.func @transform_4(%arg0: i32, %arg1: i32) -> (i32, i32, i32) {
    %c0_i32 = arith.constant 0 : i32
    %c0_i32_0 = arith.constant 0 : i32
    %c0_i32_1 = arith.constant 0 : i32
    return %arg1, %c0_i32, %c0_i32_0 : i32, i32, i32
  }
  func.func @transform_5(%arg0: i32, %arg1: i32) -> (i32, i32, i32) {
    %c0_i32 = arith.constant 0 : i32
    %c0_i32_0 = arith.constant 0 : i32
    %c0_i32_1 = arith.constant 0 : i32
    return %arg1, %c0_i32, %c0_i32_0 : i32, i32, i32
  }
  func.func @transform_6(%arg0: i32, %arg1: i32) -> (i32, i32, i32) {
    %c0_i32 = arith.constant 0 : i32
    %c0_i32_0 = arith.constant 0 : i32
    %c0_i32_1 = arith.constant 0 : i32
    return %arg1, %c0_i32, %c0_i32_0 : i32, i32, i32
  }
  func.func @transform_7(%arg0: i32, %arg1: i32) -> (i32, i32, i32) {
    %c0_i32 = arith.constant 0 : i32
    %c0_i32_0 = arith.constant 0 : i32
    %c0_i32_1 = arith.constant 0 : i32
    return %arg1, %c0_i32, %c0_i32_0 : i32, i32, i32
  }
  func.func @transform_8(%arg0: i32, %arg1: i32) -> (i32, i32, i32) {
    %c0_i32 = arith.constant 0 : i32
    %c0_i32_0 = arith.constant 0 : i32
    %c0_i32_1 = arith.constant 0 : i32
    return %arg1, %c0_i32, %c0_i32_0 : i32, i32, i32
  }
  func.func @transform_9(%arg0: i32, %arg1: i32) -> (i32, i32, i32) {
    %c0_i32 = arith.constant 0 : i32
    %c0_i32_0 = arith.constant 0 : i32
    %c0_i32_1 = arith.constant 0 : i32
    return %arg1, %c0_i32, %c0_i32_0 : i32, i32, i32
  }
  func.func @transform_10(%arg0: i32, %arg1: i32) -> (i32, i32, i32) {
    %c0_i32 = arith.constant 0 : i32
    %c0_i32_0 = arith.constant 0 : i32
    %c0_i32_1 = arith.constant 0 : i32
    return %arg1, %c0_i32, %c0_i32_0 : i32, i32, i32
  }
  func.func @transform_11(%arg0: i32, %arg1: i32) -> (i32, i32, i32) {
    %c0_i32 = arith.constant 0 : i32
    %c0_i32_0 = arith.constant 0 : i32
    %c0_i32_1 = arith.constant 0 : i32
    return %arg1, %c0_i32, %c0_i32_0 : i32, i32, i32
  }
  func.func @transform_12(%arg0: i32, %arg1: i32) -> (i32, i32, i32) {
    %c0_i32 = arith.constant 0 : i32
    %c0_i32_0 = arith.constant 0 : i32
    %c0_i32_1 = arith.constant 0 : i32
    return %arg1, %c0_i32, %c0_i32_0 : i32, i32, i32
  }
  func.func @transform_13(%arg0: i32, %arg1: i32) -> (i32, i32, i32) {
    %c0_i32 = arith.constant 0 : i32
    %c0_i32_0 = arith.constant 0 : i32
    %c0_i32_1 = arith.constant 0 : i32
    return %arg1, %c0_i32, %c0_i32_0 : i32, i32, i32
  }
  func.func @transform_14(%arg0: i32, %arg1: i32) -> (i32, i32, i32) {
    %c0_i32 = arith.constant 0 : i32
    %c0_i32_0 = arith.constant 0 : i32
    %c0_i32_1 = arith.constant 0 : i32
    return %arg1, %c0_i32, %c0_i32_0 : i32, i32, i32
  }
  func.func @transform_15(%arg0: i32, %arg1: i32) -> (i32, i32, i32) {
    %c0_i32 = arith.constant 0 : i32
    %c0_i32_0 = arith.constant 0 : i32
    %c0_i32_1 = arith.constant 0 : i32
    return %arg1, %c0_i32, %c0_i32_0 : i32, i32, i32
  }
  func.func @transform_16(%arg0: i32, %arg1: i32) -> (i32, i32) {
    %c0_i32 = arith.constant 0 : i32
    %c0_i32_0 = arith.constant 0 : i32
    %c0_i32_1 = arith.constant 0 : i32
    return %c0_i32, %c0_i32_0 : i32, i32
  }
  func.func @transform_17(%arg0: i32, %arg1: i32) -> (i32, i32) {
    %c0_i32 = arith.constant 0 : i32
    %c0_i32_0 = arith.constant 0 : i32
    %c0_i32_1 = arith.constant 0 : i32
    return %c0_i32, %c0_i32_0 : i32, i32
  }
  func.func @transform_18(%arg0: i32, %arg1: i32) -> (i32, i32) {
    %c0_i32 = arith.constant 0 : i32
    %c0_i32_0 = arith.constant 0 : i32
    %c0_i32_1 = arith.constant 0 : i32
    return %c0_i32, %c0_i32_0 : i32, i32
  }
  func.func @transform_19(%arg0: i32, %arg1: i32) -> (i32, i32) {
    %c0_i32 = arith.constant 0 : i32
    %c0_i32_0 = arith.constant 0 : i32
    %c0_i32_1 = arith.constant 0 : i32
    return %c0_i32, %c0_i32_0 : i32, i32
  }
  func.func @transform_20(%arg0: i32, %arg1: i32) -> (i32, i32, i32) {
    %c0_i32 = arith.constant 0 : i32
    %c0_i32_0 = arith.constant 0 : i32
    %c0_i32_1 = arith.constant 0 : i32
    return %arg0, %c0_i32, %c0_i32_0 : i32, i32, i32
  }
}

</mosaic_0001>

<bundles_post_ra>
// kernel: tpu_custom_call.1
= control target key start
LH: loop header
LB: loop body
LE: loop exit
PB: predicated region body
PF: predicated region fallthrough
CT: control target
= control target key end

     0   :  { %6 = vsyncpa [#allocation3], 0  ;;  %s105_s0 = inlined_call_operand.hbm [shape: f32[8,128], index: 0, kind: input, shape index: {}]   ;;  %s106_s1 = inlined_call_operand.hbm [shape: f32[8,128], index: 1, kind: output, shape index: {}]  }
   0x1   :  { %7 = vsyncpa [#allocation4], 0  ;;  %s87_s6 = smov [#allocation2]  }
   0x2   :  { %s14_s7 = sshll.u32 %s87_s6, 4  ;;  %s15_s7 = int_to_ptr.vmem [resolvable:$true] %s14_s7 }
   0x3   :  { %s51_s8 = scalar_lea.vmem %s15_s7, 128  ;;  %p56_p1 = scmp.lt.s32.totalorder %s15_s7, %s15_s7 }
   0x4   :  { %p52_p0 = scmp.ne.s32.totalorder %s15_s7, %s51_s8  ;;  %p57_p2 = scmp.lt.s32.totalorder %s51_s8, %s51_s8 }
   0x6   :  { %p58_p3 = por %p57_p2, %p56_p1 }
   0x8   :  { %p59_p4 = pnand %p58_p3, %p52_p0 }
   0xa   :  { %62 = shalt.err (!%p59_p4)
}
   0xb   :  { %17 = dma.hbm_to_vmem [thread:$0]  %s105_s0, 128, %s15_s7, [#allocation3]  }
   0xc   :  { %83 = dma.done.wait [#allocation3], 128  }
   0xd   :  { %84 = vsyncadd [#allocation3], 4294967168  ;;  %v21_v0 = vld [vmem:[#allocation2] sm:$0xff]  ;;  %s88_s11 = smov [#allocation5]  }
   0xe   :  { %41 = verf.f32 %v21_v0  ;;  %s30_s12 = sshll.u32 %s88_s11, 4  ;;  %s31_s12 = int_to_ptr.vmem [resolvable:$true] %s30_s12 }
   0xf   :  { %s63_s13 = scalar_lea.vmem %s31_s12, 128  ;;  %p68_p6 = scmp.lt.s32.totalorder %s31_s12, %s31_s12 }
  0x10   :  { %p64_p5 = scmp.ne.s32.totalorder %s31_s12, %s63_s13  ;;  %p69_p7 = scmp.lt.s32.totalorder %s63_s13, %s63_s13 }
  0x12   :  { %p70_p8 = por %p69_p7, %p68_p6 }
  0x14   :  { %p71_p9 = pnand %p70_p8, %p64_p5 }
  0x1b   :  { %v42_v1 = vpop.eup %41 }
  0x1c   :  { %23 = vst [vmem:[#allocation5] sm:$0xff] %v42_v1 }
  0x1d   :  { %74 = shalt.err (!%p71_p9)
}
  0x1e   :  { %33 = dma.vmem_to_hbm [thread:$0]  %s31_s12, 128, %s106_s1, [#allocation4]  }
  0x1f   :  { %85 = dma.done.wait [#allocation4], 128  }
  0x20   :  { %86 = vsyncadd [#allocation4], 4294967168 }
  0x21   :  { %37 = vsyncpa [#allocation3], 1 }
  0x22   :  { %38 = vsyncpa [#allocation4], 1 }

// kernel: ast_classifier_forward.1
= control target key start
LH: loop header
LB: loop body
LE: loop exit
PB: predicated region body
PF: predicated region fallthrough
CT: control target
= control target key end

     0   :  { %s3724_s0 = inlined_call_operand.vmem [shape: f32[2,23,64], index: 0, kind: input, shape index: {}]   ;;  %s3725_s1 = inlined_call_operand.vmem [shape: f32[1,23,32], index: 1, kind: input, shape index: {}]   ;;  %s3726_s2 = inlined_call_operand.vmem [shape: bf16[64,32], index: 2, kind: input, shape index: {}]   ;;  %s3727_s3 = inlined_call_operand.vmem [shape: f32[1,32], index: 3, kind: input, shape index: {}]   ;;  %s3728_s4 = inlined_call_operand.vmem [shape: f32[2,1,32], index: 4, kind: input, shape index: {}]   ;;  %s3729_s5 = inlined_call_operand.vmem [shape: f32[2,1,32], index: 5, kind: input, shape index: {}]   ;;  %s3730_s6 = inlined_call_operand.vmem [shape: bf16[2,32,96], index: 6, kind: input, shape index: {}]   ;;  %s3731_s7 = inlined_call_operand.vmem [shape: f32[2,1,96], index: 7, kind: input, shape index: {}]   ;;  %s3732_s8 = inlined_call_operand.vmem [shape: bf16[2,32,32], index: 8, kind: input, shape index: {}]   ;;  %s3733_s9 = inlined_call_operand.vmem [shape: f32[2,1,32], index: 9, kind: input, shape index: {}]   ;;  %s3734_s10 = inlined_call_operand.vmem [shape: f32[2,1,32], index: 10, kind: input, shape index: {}]   ;;  %s3735_s11 = inlined_call_operand.vmem [shape: f32[2,1,32], index: 11, kind: input, shape index: {}]   ;;  %s3736_s12 = inlined_call_operand.vmem [shape: bf16[2,32,64], index: 12, kind: input, shape index: {}]   ;;  %s3737_s13 = inlined_call_operand.vmem [shape: f32[2,1,64], index: 13, kind: input, shape index: {}]   ;;  %s3738_s14 = inlined_call_operand.vmem [shape: bf16[2,64,32], index: 14, kind: input, shape index: {}]   ;;  %s3739_s15 = inlined_call_operand.vmem [shape: f32[2,1,32], index: 15, kind: input, shape index: {}]   ;;  %s3740_s16 = inlined_call_operand.vmem [shape: f32[1,32], index: 16, kind: input, shape index: {}]   ;;  %s3741_s17 = inlined_call_operand.vmem [shape: f32[1,32], index: 17, kind: input, shape index: {}]   ;;  %s3742_s18 = inlined_call_operand.vmem [shape: bf16[32,128], index: 18, kind: input, shape index: {}]   ;;  %s3743_s19 = inlined_call_operand.vmem [shape: f32[1,128], index: 19, kind: input, shape index: {}]   ;;  %s3744_s20 = inlined_call_operand.hbm [shape: f32[2,1,128], index: 20, kind: output, shape index: {}]  }
   0x1   :  { %3761 = sst [smem:[#allocation18_spill]] %s3724_s0 }
   0x2   :  { %3762 = sst [smem:[#allocation19_spill]] %s3725_s1 }
   0x3   :  { %3763 = sst [smem:[#allocation20_spill]] %s3726_s2 }
   0x4   :  { %3764 = sst [smem:[#allocation21_spill]] %s3727_s3 }
   0x5   :  { %3765 = sst [smem:[#allocation22_spill]] %s3728_s4 }
   0x6   :  { %3766 = sst [smem:[#allocation23_spill]] %s3730_s6 }
   0x7   :  { %3767 = sst [smem:[#allocation24_spill]] %s3732_s8 }
   0x8   :  { %3768 = sst [smem:[#allocation25_spill]] %s3740_s16 }
   0x9   :  { %3769 = sst [smem:[#allocation26_spill]] %s3741_s17 }
   0xa   :  { %3770 = sst [smem:[#allocation27_spill]] %s3742_s18 }
   0xb   :  { %3771 = sst [smem:[#allocation28_spill]] %s3743_s19 }
   0xc   :  { %3772 = sst [smem:[#allocation29_spill]] %s3744_s20 }
   0xd   :  { %25 = vsyncpa [#allocation4], 0 }
   0xe   :  { %27 = vsyncpa [#allocation4 + $0x1], 0  ;;  %s3261_s1 = smov 0   ;;  %s3263_s22 = smov 0  }
   0xf   :  { %s3265_s23 = smov 0   ;;  %s3267_s24 = smov 0  }
  0x10   :  { %s3269_s2 = smov 0   ;;  %s3271_s25 = smov 0  }
  0x11   :  { %s3273_s3 = smov 0   ;;  %s3275_s26 = smov 0  }
  0x12 LB: > { %3773 = sst [smem:[#allocation6_spill]] %s3111_s1  ;;  %s2583_s27 = sadd.s32 4294967295, %s3139_s26   ;;  %s3139_s26 = sphi %s3275_s26, %s33_s26   ;;  %s3135_s3 = sphi %s3273_s3, %s3820_s3   ;;  %s3131_s25 = sphi %s3271_s25, %s3819_s25   ;;  %s3127_s2 = sphi %s3269_s2, %s3818_s2   ;;  %s3123_s24 = sphi %s3267_s24, %s3817_s24   ;;  %s3119_s23 = sphi %s3265_s23, %s3816_s23   ;;  %s3115_s22 = sphi %s3263_s22, %s3822_s22   ;;  %s3111_s1 = sphi %s3261_s1, %s3821_s1  }
  0x13   : > { %3774 = sst [smem:[#allocation7_spill]] %s3119_s23  ;;  %s2584_s28 = sadd.s32 4294967294, %s3139_s26  }
  0x14   : > { %3775 = sst [smem:[#allocation8_spill]] %s3123_s24  ;;  %s42_s4 = sadd.s32 1, %s3131_s25 }
  0x15   : > { %3776 = sst [smem:[#allocation9_spill]] %s3127_s2  ;;  %p43_p0 = scmp.ge.s32.totalorder %s42_s4, 2 }
  0x16   : > { %3777 = sst [smem:[#allocation10_spill]] %s3131_s25  ;;  %s45_s29 = sadd.s32 1, %s3135_s3 }
  0x17   : > { %3778 = sst [smem:[#allocation11_spill]] %s3135_s3  ;;  %p547_p1 = scmp.ne.s32.totalorder %s3119_s23, %s3115_s22 }
  0x18   : > { %3779 = sst [smem:[#allocation12_spill]] %s3139_s26  ;;  %p548_p2 = scmp.eq.s32.totalorder %s2583_s27, 3 }
  0x19   : > { %s3824_s4 = smov (%p43_p0, %s42_s4), 0  ;;  %s3826_s29 = smov (!%p43_p0, %s45_s29), %s3135_s3 }
  0x1a   : > { %3780 = sst [smem:[#allocation13_spill]] %s3824_s4  ;;  %p3310_p3 = por %p548_p2, %p547_p1 }
  0x1b   : > { %p553_p4 = scmp.ne.s32.totalorder %s3115_s22, %s3111_s1  ;;  %p47_p5 = scmp.ge.s32.totalorder %s3826_s29, 2 }
  0x1c   : > { %s3781_s30 = scalar_select %p3310_p3, 1, 0 }
  0x1d   : > { %p554_p6 = scmp.eq.s32.totalorder %s2584_s28, 3  ;;  %p2587_p7 = scmp.ge.s32.totalorder %s3139_s26, 1 }
  0x1e   : > { %3782 = sst [smem:[#allocation14_spill]] %s3781_s30  ;;  %p681_p8 = scmp.lt.s32.totalorder %s3139_s26, 5 }
  0x1f   : > { %s3828_s29 = smov (%p47_p5, %s3826_s29), 0  ;;  %p3320_p9 = por %p554_p6, %p553_p4 }
  0x20   : > { %3783 = sst [smem:[#allocation15_spill]] %s3828_s29  ;;  %p682_p10 = pnand %p2587_p7, %p681_p8 }
  0x21   : > { %s3784_s0 = scalar_select %p3320_p9, 1, 0 }
  0x22   : > { %s534_s21 = ssub.s32 %s3135_s3, %s3828_s29  ;;  %s537_s27 = sadd.s32 1, %s3119_s23 }
  0x23   : > { %3785 = sst [smem:[#allocation16_spill]] %s3784_s0  ;;  %p535_p11 = scmp.eq.s32.totalorder %s534_s21, 0 }
  0x24   : > { %685 = sbr.rel (%p682_p10) target bundleno = 4632 (0x1218), region = 100  ;;  %p782_p12 = scmp.lt.s32.totalorder (!%p682_p10), %s3127_s2, 1 }
  0x25   : > { %s3328_s4 = scalar_select %p535_p11, %s3119_s23, %s537_s27  }
  0x26   : > { %p787_p13 = scmp.lt.s32.totalorder (!%p682_p10), %s3123_s24, 1  ;;  %s3788_s30 = sld [smem:[#allocation18_spill]] (!%p682_p10) }
  0x27   : > { %3786 = sst [smem:[#allocation17_spill]] %s3328_s4  ;;  %s3791_s16 = sand.u32 (!%p682_p10), 1, %s3115_s22  }
  0x28   : > { %s3789_s6 = sld [smem:[#allocation23_spill]] (!%p682_p10)  ;;  %s3398_s17 = scalar_lea.vmem (!%p682_p10), [#allocation3], %s3791_s16 }
  0x29   : > { %s783_s25 = scalar_select %p782_p12, %s3127_s2, 1 }
  0x2a   : > { %s3335_s1 = scalar_select %p787_p13, %s3123_s24, 1 }
  0x2b   : > { %s2879_s21 = smul.u32 24, %s783_s25  ;;  %s3790_s8 = sld [smem:[#allocation24_spill]] }
  0x2c   : > { %s2660_s19 = sshll.u32 %s3335_s1, 4  ;;  %s814_s28 = scalar_lea.vmem %s3735_s11, %s3335_s1 }
  0x2d   : > { %s3348_s2 = scalar_lea.vmem %s3788_s30, %s2879_s21  ;;  %s3380_s25 = scalar_lea.vmem %s3736_s12, %s2660_s19 }
  0x2e   : > { %s3354_s18 = scalar_lea.vmem %s3789_s6, %s2660_s19  ;;  %s822_s29 = scalar_lea.vmem %s3737_s13, %s3335_s1 }
  0x2f   : > { %s830_s20 = scalar_lea.vmem %s3739_s15, %s3335_s1  ;;  %s3792_s6 = sld [smem:[#allocation8_spill]] }
  0x31   : > { %s3363_s23 = scalar_lea.vmem %s3790_s8, %s2660_s19  ;;  %s2663_s8 = sshll.u32 %s3335_s1, 5 }
  0x32   : > { %s3394_s21 = scalar_lea.vmem %s3738_s14, %s2663_s8 }
  0x35   : > { %p2597_p0 = scmp.ne.s32.totalorder %s3792_s6, 0 }
  0x36   : > { %s3793_s3 = sld [smem:[#allocation20_spill]] (!%p2597_p0) }
  0x37   : > { %835 = sbr.rel (%p2597_p0) target bundleno = 281 (0x119), region = 104  ;;  %s3795_s24 = sld [smem:[#allocation21_spill]] (!%p2597_p0) }
  0x38   : > { %s3796_s4 = sld [smem:[#allocation19_spill]] (!%p2597_p0) }
  0x3c   : > { %s3794_s27 = smov %s3793_s3  ;;  %v2965_v0 = vld [vmem:[%s3793_s3 + $0x18] sm:$0xff]   ;;  %v836_v3 = vld [vmem:[%s3348_s2] sm:$0xff]  ;;  %v837_v4 = vld [vmem:[%s3348_s2 + $0x8] sm:$0xff]  ;;  %vm880_vm0 = vcmask 523264   ;;  %vm944_vm1 = vcmask 260096   ;;  %vm941_vm2 = vcmask 261120  }
  0x3d   : > { %v2966_v1 = vld [vmem:[%s3794_s27 + $0x10] sm:$0xff]   ;;  %2731 = vmatprep.subr.bf16.mxu0 %v2965_v0  ;;  %v2967_v2 = vld [vmem:[%s3794_s27 + $0x8] sm:$0xff]   ;;  %v839_v5 = vpack.c.bf16 %v837_v4, %v836_v3  ;;  %v2968_v6 = vld [vmem:[%s3794_s27] sm:$0xff]  }
  0x3e   : > { %2732 = vmatpush3.bf16.msra.mxu0 %v2965_v0  ;;  %v838_v7 = vld [vmem:[%s3348_s2 + $0x10] sm:$0x7f]  ;;  %v2598_v9 = vld [vmem:[%s3795_s24] ss:$0 sm:$0xff]  ;;  %v936_v20 = vld [vmem:[%s3796_s4 + $0x8] sm:$0xff] }
  0x3f   : > { %2733 = vmatprep.subr.bf16.mxu0 %v2966_v1  ;;  %2739 = vmatprep.mubr.msk.bf16.mxu0 %vm880_vm0, %v839_v5  ;;  %v840_v8 = vpack.c.bf16 %v838_v7, %v838_v7  ;;  %v937_v11 = vld [vmem:[%s3796_s4 + $0x10] sm:$0x7f]  ;;  %v935_v14 = vld [vmem:[%s3796_s4] sm:$0xff] }
  0x42   : > { %2734 = vmatpush3.bf16.msra.mxu0 %v2966_v1 }
  0x43   : > { %2735 = vmatprep.subr.bf16.mxu0 %v2967_v2 }
  0x46   : > { %2736 = vmatpush3.bf16.msra.mxu0 %v2967_v2 }
  0x47   : > { %2737 = vmatprep.subr.bf16.mxu0 %v2968_v6 }
  0x4a   : > { %2738 = vmatpush3.bf16.msra.mxu0 %v2968_v6 }
  0x4d   : > { %2740 = vmatmul.mubr.msk.bf16.vlgmr.msra.gmra.mxu0 %vm880_vm0, %v840_v8 }
 0x10d   : > { %v2741_v10 = vpop.f32.mrf.mxu0 }
 0x10e   : > { %v930_v12 = vadd.f32 %v2741_v10, %v2598_v9 }
 0x10f   : > { %v921_v13 = vpop.f32.mrf.mxu0 }
 0x110   : > { %v940_v15 = vadd.f32 %v937_v11, %v930_v12  ;;  %v922_v16 = vadd.f32 %v2598_v9, %v921_v13 }
 0x111   : > { %v2742_v17 = vpop.f32.mrf.mxu0 }
 0x112   : > { %945 = vst.msk [vmem:[#allocation2 + $0x10] sm:$0x7f] %vm944_vm1, %v940_v15  ;;  %v938_v18 = vadd.f32 %v935_v14, %v922_v16 }
 0x113   : > { %v924_v19 = vpop.f32.mrf.mxu0 }
 0x114   : > { %942 = vst.msk [vmem:[#allocation2] sm:$0xff] %vm941_vm2, %v938_v18  ;;  %v925_v21 = vadd.f32 %v2598_v9, %v924_v19 }
 0x116   : > { %v939_v22 = vadd.f32 %v936_v20, %v925_v21 }
 0x118   : > { %943 = vst.msk [vmem:[#allocation2 + $0x8] sm:$0xff] %vm941_vm2, %v939_v22 }
 0x119 PF: > { %vm951_vm3 = vcmask 261120   ;;  %v3430_v24 = vld [vmem:[#allocation2 + $0x10] sm:$0x7f]  ;;  %vm958_vm4 = vcmask 260096   ;;  %v2969_v44 = vld [vmem:[%s3354_s18 + $0x8] sm:$0xff]   ;;  %v2970_v45 = vld [vmem:[%s3354_s18] sm:$0xff]   ;;  %s3799_s0 = scalar_lea.vmem %s3729_s5, %s3335_s1  ;;  %s3800_s2 = scalar_lea.vmem %s3731_s7, %s3335_s1 }
 0x11a   : > { %v959_v27 = vsel %vm958_vm4, %v3430_v24, 0.0  ;;  %2743 = vmatprep.subr.bf16.mxu1 %v2969_v44  ;;  %s3797_s6 = sld [smem:[#allocation22_spill]]  ;;  %v2606_v63 = vld [vmem:[%s3799_s0] ss:$0 sm:$0xff]  ;;  %s3141_s30 = smov 96   ;;  %vm1102_vm5 = vcmask 64512  }
 0x11b   : > { %v3428_v23 = vld [vmem:[#allocation2] sm:$0xff]  ;;  %960 = vadd.xlane.f32.xlu1 %v959_v27  ;;  %2744 = vmatpush3.bf16.msra.mxu1 %v2969_v44  ;;  %vm1163_vm6 = vcmask 187392   ;;  %vm1170_vm7 = vcmask 186368   ;;  %s3142_s18 = smov 64   ;;  %s3143_s16 = smov 120   ;;  %vm1211_vm8 = vcmask 1042432  }
 0x11c   : > { %v952_v26 = vsel %vm951_vm3, %v3428_v23, 0.0  ;;  %2745 = vmatprep.subr.bf16.mxu1 %v2970_v45  ;;  %v2607_v7 = vld [vmem:[%s3800_s2] ss:$0 sm:$0xff]  ;;  %vm1212_vm9 = vcmask 1043456   ;;  %s3147_s24 = smov 80   ;;  %s3148_s3 = smov 112  }
 0x11d   : > { %953 = vadd.xlane.f32.xlu0 %v952_v26  ;;  %s3149_s0 = smov 72   ;;  %s3150_s8 = smov 104   ;;  %vm2222_vm10 = vcmask 523264  }
 0x11e   : > { %s3151_s26 = smov 48   ;;  %s3152_s2 = smov 40  }
 0x11f   : > { %v3432_v25 = vld [vmem:[#allocation2 + $0x8] sm:$0xff]  ;;  %2746 = vmatpush3.bf16.msra.mxu1 %v2970_v45 }
 0x120   : > { %v955_v28 = vsel %vm951_vm3, %v3432_v25, 0.0  ;;  %s3798_s19 = scalar_lea.vmem %s3797_s6, %s3335_s1  ;;  %s3144_s6 = smov 88  }
 0x121   : > { %956 = vadd.xlane.f32.xlu0 %v955_v28  ;;  %v2605_v57 = vld [vmem:[%s3798_s19] ss:$0 sm:$0xff]  ;;  %s3146_s19 = smov 56  }
 0x1a4   : > { %v961_v30 = vpop.xlane.xlu1 %960 }
 0x1a5   : > { %v965_v32 = vmul.f32 0.03125, %v961_v30 }
 0x1a6   : > { %v954_v29 = vpop.xlane.xlu0 %953 }
 0x1a7   : > { %v963_v31 = vmul.f32 0.03125, %v954_v29  ;;  %v968_v34 = vsub.f32 %v3430_v24, %v965_v32 }
 0x1a9   : > { %v966_v33 = vsub.f32 %v3428_v23, %v963_v31  ;;  %v971_v38 = vmul.f32 %v968_v34, %v968_v34 }
 0x1aa   : > { %v957_v35 = vpop.xlane.xlu0 %956 }
 0x1ab   : > { %v964_v36 = vmul.f32 0.03125, %v957_v35  ;;  %v969_v37 = vmul.f32 %v966_v33, %v966_v33  ;;  %v978_v41 = vsel %vm958_vm4, %v971_v38, 0.0 }
 0x1ad   : > { %v967_v39 = vsub.f32 %v3432_v25, %v964_v36  ;;  %v972_v40 = vsel %vm951_vm3, %v969_v37, 0.0 }
 0x1ae   : > { %973 = vadd.xlane.f32.xlu1 %v972_v40 }
 0x1af   : > { %v970_v42 = vmul.f32 %v967_v39, %v967_v39 }
 0x1b1   : > { %v975_v43 = vsel %vm951_vm3, %v970_v42, 0.0 }
 0x1b2   : > { %979 = vadd.xlane.f32.xlu1 %v978_v41  ;;  %976 = vadd.xlane.f32.xlu0 %v975_v43 }
 0x237   : > { %v974_v46 = vpop.xlane.xlu1 %973 }
 0x238   : > { %v981_v47 = vmul.f32 0.03125, %v974_v46  ;;  %v3145_v46 = vmov 65535  }
 0x23a   : > { %v984_v48 = vadd.f32 1e-12, %v981_v47  ;;  %v1213_v47 = vsel %vm1211_vm8, 4294967295, %v3145_v46 }
 0x23b   : > { %v980_v49 = vpop.xlane.xlu1 %979  ;;  %v977_v50 = vpop.xlane.xlu0 %976 }
 0x23c   : > { %2977 = vrsqrt.f32 %v984_v48  ;;  %v983_v51 = vmul.f32 0.03125, %v980_v49  ;;  %v982_v52 = vmul.f32 0.03125, %v977_v50  ;;  %v3492_v49 = vsel %vm1212_vm9, %v1213_v47, 0 }
 0x23e   : > { %v986_v53 = vadd.f32 1e-12, %v983_v51  ;;  %v985_v54 = vadd.f32 1e-12, %v982_v52 }
 0x240   : > { %2979 = vrsqrt.f32 %v986_v53 }
 0x241   : > { %2981 = vrsqrt.f32 %v985_v54 }
 0x249   : > { %v2978_v55 = vpop.eup %2977 }
 0x24a   : > { %v990_v56 = vmul.f32 %v2978_v55, %v966_v33 }
 0x24c   : > { %v999_v62 = vmul.f32 %v2605_v57, %v990_v56 }
 0x24d   : > { %v2980_v58 = vpop.eup %2979 }
 0x24e   : > { %v2982_v59 = vpop.eup %2981  ;;  %v992_v60 = vmul.f32 %v2980_v58, %v968_v34  ;;  %v1008_v3 = vadd.f32 %v2606_v63, %v999_v62 }
 0x24f   : > { %v991_v61 = vmul.f32 %v2982_v59, %v967_v39 }
 0x250   : > { %v1001_v0 = vmul.f32 %v2605_v57, %v992_v60 }
 0x251   : > { %v1000_v1 = vmul.f32 %v2605_v57, %v991_v61 }
 0x252   : > { %v1010_v2 = vadd.f32 %v2606_v63, %v1001_v0 }
 0x253   : > { %v1009_v4 = vadd.f32 %v2606_v63, %v1000_v1 }
 0x254   : > { %v1012_v5 = vpack.c.bf16 %v1010_v2, %v1010_v2 }
 0x255   : > { %v1011_v6 = vpack.c.bf16 %v1009_v4, %v1008_v3 }
 0x257   : > { %2747 = vmatprep.mubr.msk.bf16.mxu1 %vm951_vm3, %v1011_v6 }
 0x258   : > { %2748 = vmatmul.mubr.msk.bf16.vlgmr.msra.gmra.mxu1 %vm951_vm3, %v1012_v5  ;;  %v1092_v5 = vld [vmem:[%s3363_s23] sm:$0xf] }
 0x259   : > { %v1499_v6 = vsel %vm1212_vm9, %v1092_v5, 0 }
 0x318   : > { %v2749_v8 = vpop.f32.mrf.mxu1 }
 0x319   : > { %v1085_v9 = vadd.f32 %v2749_v8, %v2607_v7 }
 0x31a   : > { %v1076_v10 = vpop.f32.mrf.mxu1 }
 0x31b   : > { %v3465_v11 = vpack.c.bf16 %v1085_v9, %v1085_v9  ;;  %v1077_v14 = vadd.f32 %v2607_v7, %v1076_v10 }
 0x31c   : > { %v2750_v12 = vpop.f32.mrf.mxu1 }
 0x31d   : > { %1100 = vrot.lane.b32.xlu0 %v3465_v11, %s3141_s30 }
 0x31e   : > { %v1079_v13 = vpop.f32.mrf.mxu1 }
 0x31f   : > { %v1080_v15 = vadd.f32 %v2607_v7, %v1079_v13 }
 0x321   : > { %v3468_v16 = vpack.c.bf16 %v1080_v15, %v1077_v14 }
 0x323   : > { %1098 = vrot.lane.b32.xlu1 %v3468_v16, %s3141_s30  ;;  %2755 = vmatprep.mubr.msk.bf16.mxu1 %vm1102_vm5, %v3468_v16 }
 0x38f   : > { %v1101_v17 = vpop.permute.xlu0 %1100 }
 0x390   : > { %v1113_v18 = vsel %vm1102_vm5, %v1101_v17, 0  ;;  %2867 = vmatprep.subr.msk.bf16.mxu1 %vm1102_vm5, %v1101_v17 }
 0x391   : > { %2752 = vmatpush3.bf16.xpose.msra.mxu1 %v1113_v18 }
 0x395   : > { %v1099_v19 = vpop.permute.xlu1 %1098 }
 0x396   : > { %2868 = vmatprep.subr.msk.bf16.mxu1 %vm1102_vm5, %v1099_v19  ;;  %v1110_v20 = vsel %vm1102_vm5, %v1099_v19, 0 }
 0x399   : > { %2754 = vmatpush3.bf16.xpose.msra.mxu1 %v1110_v20 }
 0x3a0   : > { %2756 = vmatmul.mubr.msk.bf16.vlgmr.msra.gmra.mxu1 %vm1102_vm5, %v3465_v11 }
 0x460   : > { %v2757_v21 = vpop.f32.mrf.mxu1 }
 0x461   : > { %v1171_v30 = vsel %vm1170_vm7, %v2757_v21, -inf }
 0x462   : > { %v1149_v22 = vpop.f32.mrf.mxu1 }
 0x463   : > { %v1164_v26 = vsel %vm1163_vm6, %v1149_v22, -inf }
 0x464   : > { %1165 = vmax.xlane.f32.xlu1 %v1164_v26  ;;  %v2758_v27 = vpop.f32.mrf.mxu1 }
 0x466   : > { %v1152_v28 = vpop.f32.mrf.mxu1 }
 0x467   : > { %v1167_v29 = vsel %vm1163_vm6, %v1152_v28, -inf }
 0x468   : > { %1168 = vmax.xlane.f32.xlu0 %v1167_v29 }
 0x46c   : > { %1172 = vmax.xlane.f32.xlu0 %v1171_v30 }
 0x4ed   : > { %v1166_v31 = vpop.xlane.xlu1 %1165 }
 0x4ee   : > { %v1174_v34 = vsub.f32 %v1149_v22, %v1166_v31 }
 0x4f0   : > { %v1177_v38 = vmul.f32 1.442695, %v1174_v34 }
 0x4f1   : > { %v1169_v32 = vpop.xlane.xlu0 %1168 }
 0x4f2   : > { %v1175_v33 = vsub.f32 %v1152_v28, %v1169_v32 }
 0x4f4   : > { %v1179_v35 = vmul.f32 1.442695, %v1175_v33 }
 0x4f5   : > { %v1173_v36 = vpop.xlane.xlu0 %1172 }
 0x4f6   : > { %2983 = vpow2.f32 %v1179_v35  ;;  %v1176_v37 = vsub.f32 %v2757_v21, %v1173_v36 }
 0x4f8   : > { %v1181_v39 = vmul.f32 1.442695, %v1176_v37 }
 0x4fa   : > { %2985 = vpow2.f32 %v1181_v39 }
 0x4fb   : > { %2987 = vpow2.f32 %v1177_v38 }
 0x503   : > { %v2984_v40 = vpop.eup %2983 }
 0x504   : > { %v1186_v41 = vsel %vm1163_vm6, %v2984_v40, 0.0 }
 0x505   : > { %1187 = vadd.xlane.f32.xlu0 %v1186_v41 }
 0x507   : > { %v2986_v42 = vpop.eup %2985 }
 0x508   : > { %v1189_v43 = vsel %vm1170_vm7, %v2986_v42, 0.0  ;;  %v2988_v44 = vpop.eup %2987 }
 0x509   : > { %1190 = vadd.xlane.f32.xlu1 %v1189_v43  ;;  %v1183_v45 = vsel %vm1163_vm6, %v2988_v44, 0.0 }
 0x50d   : > { %1184 = vadd.xlane.f32.xlu1 %v1183_v45 }
 0x51b   : > { %1202 = vrot.lane.b32.xlu0 %v3465_v11, %s3142_s18 }
 0x51e   : > { %1200 = vrot.lane.b32.xlu1 %v3468_v16, %s3142_s18  ;;  %s3801_s18 = scalar_lea.vmem %s3733_s9, %s3335_s1 }
 0x51f   : > { %1268 = vrot.lane.b32.xlu0 %v3468_v16, %s3143_s16 }
 0x522   : > { %1274 = vrot.lane.b32.xlu1 %v3465_v11, %s3144_s6 }
 0x526   : > { %1272 = vrot.lane.b32.xlu1 %v3468_v16, %s3144_s6  ;;  %s3802_s6 = scalar_lea.vmem %s3734_s10, %s3335_s1  ;;  %s3803_s1 = sld [smem:[#allocation8_spill]] }
 0x52a   : > { %1270 = vrot.lane.b32.xlu1 %v3465_v11, %s3143_s16 }
 0x52c   : > { %p2651_p1 = scmp.ne.s32.totalorder %s3803_s1, 1 }
 0x58e   : > { %v1188_v48 = vpop.xlane.xlu0 %1187 }
 0x592   : > { %v1191_v50 = vpop.xlane.xlu1 %1190  ;;  %v1203_v51 = vpop.permute.xlu0 %1202 }
 0x593   : > { %v1216_v52 = vand.u32 %v3492_v49, %v1203_v51  ;;  %2989 = vrcp.f32 %v1191_v50  ;;  %v1093_v50 = vld [vmem:[%s3363_s23 + $0x4] sm:$0xf] }
 0x594   : > { %2991 = vrcp.f32 %v1188_v48 }
 0x595   : > { %2759 = vmatprep.subr.bf16.mxu0 %v1216_v52 }
 0x596   : > { %v1185_v53 = vpop.xlane.xlu1 %1184  ;;  %2760 = vmatpush3.bf16.msra.mxu0 %v1216_v52  ;;  %v1269_v0 = vpop.permute.xlu0 %1268 }
 0x597   : > { %2993 = vrcp.f32 %v1185_v53 }
 0x59a   : > { %v1201_v54 = vpop.permute.xlu1 %1200 }
 0x59b   : > { %2761 = vmatprep.subr.bf16.mxu0 %v1201_v54 }
 0x59c   : > { %2762 = vmatpush3.bf16.msra.mxu0 %v1201_v54 }
 0x59e   : > { %v1275_v55 = vpop.permute.xlu1 %1274 }
 0x59f   : > { %2869 = vmatprep.subr.msk.bf16.mxu0 %vm1102_vm5, %v1275_v55  ;;  %v1286_v1 = vsel %vm1102_vm5, %v1275_v55, 0 }
 0x5a0   : > { %v2990_v56 = vpop.eup %2989 }
 0x5a1   : > { %v2992_v57 = vpop.eup %2991  ;;  %v1197_v59 = vmul.f32 %v2990_v56, %v2986_v42 }
 0x5a2   : > { %v1196_v61 = vmul.f32 %v2992_v57, %v2984_v40  ;;  %v1273_v2 = vpop.permute.xlu1 %1272 }
 0x5a3   : > { %v1199_v63 = vpack.c.bf16 %v1197_v59, %v1197_v59  ;;  %v1283_v3 = vsel %vm1102_vm5, %v1273_v2, 0  ;;  %v1442_v59 = vsel %vm1212_vm9, %v1093_v50, 0 }
 0x5a4   : > { %v2994_v58 = vpop.eup %2993 }
 0x5a5   : > { %v1195_v60 = vmul.f32 %v2994_v58, %v2988_v44 }
 0x5a6   : > { %v1271_v4 = vpop.permute.xlu1 %1270 }
 0x5a7   : > { %v1198_v62 = vpack.c.bf16 %v1196_v61, %v1195_v60 }
 0x5a9   : > { %2763 = vmatprep.mubr.msk.bf16.mxu0 %vm1163_vm6, %v1198_v62 }
 0x5aa   : > { %2764 = vmatmul.mubr.msk.bf16.vlgmr.msra.gmra.mxu0 %vm1163_vm6, %v1199_v63 }
 0x5ab   : > { %2768 = vmatpush3.bf16.xpose.msra.mxu0 %v1286_v1  ;;  %2771 = vmatprep.mubr.msk.bf16.mxu0 %vm1102_vm5, %v1269_v0 }
 0x5ac   : > { %2870 = vmatprep.subr.msk.bf16.mxu0 %vm1102_vm5, %v1273_v2 }
 0x5b3   : > { %2770 = vmatpush3.bf16.xpose.msra.mxu0 %v1283_v3 }
 0x5b4   : > { %2872 = vmatprep.subr.msk.bf16.mxu0 %vm1212_vm9, %v1092_v5 }
 0x5ba   : > { %2772 = vmatmul.mubr.msk.bf16.vlgmr.msra.gmra.mxu0 %vm1102_vm5, %v1271_v4 }
 0x5bb   : > { %2790 = vmatpush3.bf16.msra.mxu0 %v1499_v6 }
 0x66a   : > { %v2765_v7 = vpop.f32.mrf.mxu0 }
 0x66b   : > { %v1267_v13 = vpack.c.bf16 %v2765_v7, %v2765_v7 }
 0x66c   : > { %v1252_v8 = vpop.f32.mrf.mxu0 }
 0x66e   : > { %v2766_v9 = vpop.f32.mrf.mxu0 }
 0x670   : > { %v1255_v10 = vpop.f32.mrf.mxu0 }
 0x671   : > { %v1266_v12 = vpack.c.bf16 %v1255_v10, %v1252_v8 }
 0x673   : > { %2791 = vmatprep.mubr.msk.bf16.mxu0 %vm1102_vm5, %v1266_v12 }
 0x674   : > { %2792 = vmatmul.mubr.msk.bf16.vlgmr.msra.gmra.mxu0 %vm1102_vm5, %v1267_v13 }
 0x67a   : > { %v2773_v14 = vpop.f32.mrf.mxu0 }
 0x67b   : > { %v1342_v20 = vsel %vm1170_vm7, %v2773_v14, -inf }
 0x67c   : > { %v1322_v15 = vpop.f32.mrf.mxu0 }
 0x67d   : > { %v1336_v17 = vsel %vm1163_vm6, %v1322_v15, -inf }
 0x67e   : > { %1337 = vmax.xlane.f32.xlu0 %v1336_v17  ;;  %v2774_v18 = vpop.f32.mrf.mxu0 }
 0x680   : > { %v1325_v19 = vpop.f32.mrf.mxu0 }
 0x681   : > { %v1339_v21 = vsel %vm1163_vm6, %v1325_v19, -inf }
 0x682   : > { %1343 = vmax.xlane.f32.xlu0 %v1342_v20  ;;  %1340 = vmax.xlane.f32.xlu1 %v1339_v21 }
 0x707   : > { %v1338_v22 = vpop.xlane.xlu0 %1337 }
 0x708   : > { %v1345_v26 = vsub.f32 %v1322_v15, %v1338_v22 }
 0x70a   : > { %v1348_v27 = vmul.f32 1.442695, %v1345_v26 }
 0x70b   : > { %v1344_v28 = vpop.xlane.xlu0 %1343  ;;  %v1341_v29 = vpop.xlane.xlu1 %1340 }
 0x70c   : > { %2995 = vpow2.f32 %v1348_v27  ;;  %v1347_v30 = vsub.f32 %v2773_v14, %v1344_v28  ;;  %v1346_v31 = vsub.f32 %v1325_v19, %v1341_v29 }
 0x70e   : > { %v1352_v32 = vmul.f32 1.442695, %v1347_v30  ;;  %v1350_v33 = vmul.f32 1.442695, %v1346_v31 }
 0x710   : > { %2997 = vpow2.f32 %v1352_v32 }
 0x711   : > { %2999 = vpow2.f32 %v1350_v33 }
 0x719   : > { %v2996_v34 = vpop.eup %2995 }
 0x71a   : > { %v1354_v35 = vsel %vm1163_vm6, %v2996_v34, 0.0 }
 0x71b   : > { %1355 = vadd.xlane.f32.xlu0 %v1354_v35 }
 0x71d   : > { %v2998_v36 = vpop.eup %2997 }
 0x71e   : > { %v3000_v37 = vpop.eup %2999  ;;  %v1360_v38 = vsel %vm1170_vm7, %v2998_v36, 0.0 }
 0x71f   : > { %1361 = vadd.xlane.f32.xlu1 %v1360_v38  ;;  %v1357_v39 = vsel %vm1163_vm6, %v3000_v37, 0.0 }
 0x720   : > { %1358 = vadd.xlane.f32.xlu0 %v1357_v39 }
 0x730   : > { %1371 = vrot.lane.b32.xlu1 %v3468_v16, %s3146_s19 }
 0x734   : > { %1555 = vrot.lane.b32.xlu1 %v3465_v11, %s3147_s24  ;;  %v3516_v40 = vpop.f32.mrf.mxu0 }
 0x736   : > { %1373 = vrot.lane.b32.xlu0 %v3465_v11, %s3146_s19  ;;  %v3519_v41 = vpop.f32.mrf.mxu0 }
 0x738   : > { %1553 = vrot.lane.b32.xlu1 %v3468_v16, %s3147_s24  ;;  %v2794_v42 = vpop.f32.mrf.mxu0 }
 0x73a   : > { %1549 = vrot.lane.b32.xlu0 %v3468_v16, %s3148_s3 }
 0x73c   : > { %1551 = vrot.lane.b32.xlu1 %v3465_v11, %s3148_s3 }
 0x73e   : > { %1782 = vrot.lane.b32.xlu0 %v3465_v11, %s3149_s0 }
 0x740   : > { %1780 = vrot.lane.b32.xlu1 %v3468_v16, %s3149_s0 }
 0x742   : > { %1776 = vrot.lane.b32.xlu0 %v3468_v16, %s3150_s8 }
 0x744   : > { %1778 = vrot.lane.b32.xlu1 %v3465_v11, %s3150_s8  ;;  %s3804_s8 = sld [smem:[#allocation27_spill]] (!%p2651_p1) }
 0x7a4   : > { %v1356_v43 = vpop.xlane.xlu0 %1355 }
 0x7a5   : > { %3001 = vrcp.f32 %v1356_v43 }
 0x7a8   : > { %v1362_v44 = vpop.xlane.xlu1 %1361 }
 0x7a9   : > { %v1359_v45 = vpop.xlane.xlu0 %1358  ;;  %3003 = vrcp.f32 %v1362_v44 }
 0x7aa   : > { %3005 = vrcp.f32 %v1359_v45 }
 0x7ac   : > { %v1372_v48 = vpop.permute.xlu1 %1371 }
 0x7ad   : > { %v1374_v46 = vpop.permute.xlu0 %1373 }
 0x7ae   : > { %v1383_v47 = vand.u32 %v1374_v46, %v3492_v49 }
 0x7b0   : > { %2775 = vmatprep.subr.bf16.mxu1 %v1383_v47  ;;  %v1556_v60 = vpop.permute.xlu1 %1555 }
 0x7b1   : > { %2776 = vmatpush3.bf16.msra.mxu1 %v1383_v47  ;;  %v1550_v3 = vpop.permute.xlu0 %1549  ;;  %v1567_v4 = vsel %vm1102_vm5, %v1556_v60, 0 }
 0x7b2   : > { %2777 = vmatprep.subr.bf16.mxu1 %v1372_v48  ;;  %v3002_v51 = vpop.eup %3001 }
 0x7b3   : > { %v1366_v55 = vmul.f32 %v3002_v51, %v2996_v34 }
 0x7b4   : > { %v1554_v5 = vpop.permute.xlu1 %1553 }
 0x7b5   : > { %2778 = vmatpush3.bf16.msra.mxu1 %v1372_v48  ;;  %v1564_v6 = vsel %vm1102_vm5, %v1554_v5, 0  ;;  %v1783_v7 = vpop.permute.xlu0 %1782 }
 0x7b6   : > { %v3004_v52 = vpop.eup %3003  ;;  %2871 = vmatprep.subr.msk.bf16.mxu1 %vm1212_vm9, %v1093_v50  ;;  %v1794_v9 = vsel %vm1102_vm5, %v1783_v7, 0 }
 0x7b7   : > { %v3006_v53 = vpop.eup %3005  ;;  %v1368_v54 = vmul.f32 %v3004_v52, %v2998_v36 }
 0x7b8   : > { %v1367_v56 = vmul.f32 %v3006_v53, %v3000_v37  ;;  %v1552_v8 = vpop.permute.xlu1 %1551 }
 0x7b9   : > { %v1370_v57 = vpack.c.bf16 %v1368_v54, %v1368_v54  ;;  %v1777_v10 = vpop.permute.xlu0 %1776 }
 0x7ba   : > { %v1369_v58 = vpack.c.bf16 %v1367_v56, %v1366_v55 }
 0x7bc   : > { %2779 = vmatprep.mubr.msk.bf16.mxu1 %vm1163_vm6, %v1369_v58  ;;  %v1781_v12 = vpop.permute.xlu1 %1780 }
 0x7bd   : > { %2780 = vmatmul.mubr.msk.bf16.vlgmr.msra.gmra.mxu1 %vm1163_vm6, %v1370_v57  ;;  %v1791_v13 = vsel %vm1102_vm5, %v1781_v12, 0 }
 0x7be   : > { %2784 = vmatpush3.bf16.msra.mxu1 %v1442_v59 }
 0x7bf   : > { %2873 = vmatprep.subr.msk.bf16.mxu1 %vm1102_vm5, %v1556_v60 }
 0x7c0   : > { %v1779_v14 = vpop.permute.xlu1 %1778 }
 0x87d   : > { %v2781_v61 = vpop.f32.mrf.mxu1 }
 0x87e   : > { %v1434_v2 = vpack.c.bf16 %v2781_v61, %v2781_v61 }
 0x87f   : > { %v1419_v62 = vpop.f32.mrf.mxu1 }
 0x881   : > { %v2782_v63 = vpop.f32.mrf.mxu1 }
 0x883   : > { %v1422_v0 = vpop.f32.mrf.mxu1 }
 0x884   : > { %v1433_v1 = vpack.c.bf16 %v1422_v0, %v1419_v62 }
 0x886   : > { %2785 = vmatprep.mubr.msk.bf16.mxu1 %vm1102_vm5, %v1433_v1 }
 0x887   : > { %2786 = vmatmul.mubr.msk.bf16.vlgmr.msra.gmra.mxu1 %vm1102_vm5, %v1434_v2 }
 0x888   : > { %2796 = vmatpush3.bf16.xpose.msra.mxu1 %v1567_v4  ;;  %2799 = vmatprep.mubr.msk.bf16.mxu1 %vm1102_vm5, %v1550_v3 }
 0x889   : > { %2874 = vmatprep.subr.msk.bf16.mxu1 %vm1102_vm5, %v1554_v5 }
 0x890   : > { %2798 = vmatpush3.bf16.xpose.msra.mxu1 %v1564_v6 }
 0x891   : > { %2876 = vmatprep.subr.msk.bf16.mxu1 %vm1102_vm5, %v1783_v7 }
 0x897   : > { %2800 = vmatmul.mubr.msk.bf16.vlgmr.msra.gmra.mxu1 %vm1102_vm5, %v1552_v8 }
 0x898   : > { %2818 = vmatpush3.bf16.xpose.msra.mxu1 %v1794_v9  ;;  %2821 = vmatprep.mubr.msk.bf16.mxu1 %vm1102_vm5, %v1777_v10 }
 0x899   : > { %2877 = vmatprep.subr.msk.bf16.mxu1 %vm1102_vm5, %v1781_v12 }
 0x8a0   : > { %2820 = vmatpush3.bf16.xpose.msra.mxu1 %v1791_v13 }
 0x8a7   : > { %2822 = vmatmul.mubr.msk.bf16.vlgmr.msra.gmra.mxu1 %vm1102_vm5, %v1779_v14 }
 0x947   : > { %v3548_v15 = vpop.f32.mrf.mxu1 }
 0x949   : > { %v3550_v17 = vpop.f32.mrf.mxu1 }
 0x94b   : > { %v2788_v18 = vpop.f32.mrf.mxu1 }
 0x94d   : > { %v3552_v19 = vpop.f32.mrf.mxu1 }
 0x957   : > { %v2801_v20 = vpop.f32.mrf.mxu1 }
 0x958   : > { %v1623_v28 = vsel %vm1170_vm7, %v2801_v20, -inf }
 0x959   : > { %v1603_v21 = vpop.f32.mrf.mxu1 }
 0x95a   : > { %v1617_v22 = vsel %vm1163_vm6, %v1603_v21, -inf }
 0x95b   : > { %1618 = vmax.xlane.f32.xlu0 %v1617_v22  ;;  %v2802_v26 = vpop.f32.mrf.mxu1 }
 0x95d   : > { %v1606_v27 = vpop.f32.mrf.mxu1 }
 0x95e   : > { %v1620_v29 = vsel %vm1163_vm6, %v1606_v27, -inf }
 0x95f   : > { %1624 = vmax.xlane.f32.xlu0 %v1623_v28  ;;  %1621 = vmax.xlane.f32.xlu1 %v1620_v29  ;;  %v1094_v28 = vld [vmem:[%s3363_s23 + $0x8] sm:$0xf] }
 0x960   : > { %v1723_v29 = vsel %vm1212_vm9, %v1094_v28, 0 }
 0x967   : > { %v3557_v30 = vpop.f32.mrf.mxu1 }
 0x968   : > { %v1850_v54 = vsel %vm1170_vm7, %v3557_v30, -inf }
 0x969   : > { %v3559_v31 = vpop.f32.mrf.mxu1 }
 0x96a   : > { %v1844_v52 = vsel %vm1163_vm6, %v3559_v31, -inf }
 0x96b   : > { %v2824_v32 = vpop.f32.mrf.mxu1 }
 0x96d   : > { %v1833_v51 = vpop.f32.mrf.mxu1 }
 0x96e   : > { %v1847_v53 = vsel %vm1163_vm6, %v1833_v51, -inf }
 0x9e4   : > { %v1619_v33 = vpop.xlane.xlu0 %1618 }
 0x9e5   : > { %v1626_v34 = vsub.f32 %v1603_v21, %v1619_v33 }
 0x9e7   : > { %v1629_v35 = vmul.f32 1.442695, %v1626_v34 }
 0x9e8   : > { %v1625_v36 = vpop.xlane.xlu0 %1624  ;;  %v1622_v37 = vpop.xlane.xlu1 %1621 }
 0x9e9   : > { %3007 = vpow2.f32 %v1629_v35  ;;  %v1628_v38 = vsub.f32 %v2801_v20, %v1625_v36  ;;  %v1627_v39 = vsub.f32 %v1606_v27, %v1622_v37 }
 0x9eb   : > { %v1633_v42 = vmul.f32 1.442695, %v1628_v38  ;;  %v1631_v43 = vmul.f32 1.442695, %v1627_v39 }
 0x9ed   : > { %3009 = vpow2.f32 %v1633_v42 }
 0x9ee   : > { %3011 = vpow2.f32 %v1631_v43 }
 0x9f6   : > { %v3008_v44 = vpop.eup %3007 }
 0x9f7   : > { %v1635_v45 = vsel %vm1163_vm6, %v3008_v44, 0.0 }
 0x9f8   : > { %1636 = vadd.xlane.f32.xlu0 %v1635_v45 }
 0x9fa   : > { %v3010_v46 = vpop.eup %3009 }
 0x9fb   : > { %v3012_v47 = vpop.eup %3011  ;;  %v1641_v48 = vsel %vm1170_vm7, %v3010_v46, 0.0 }
 0x9fc   : > { %1642 = vadd.xlane.f32.xlu1 %v1641_v48  ;;  %v1638_v50 = vsel %vm1163_vm6, %v3012_v47, 0.0 }
 0x9fd   : > { %1639 = vadd.xlane.f32.xlu0 %v1638_v50 }
 0xa0d   : > { %1652 = vrot.lane.b32.xlu1 %v3468_v16, %s3151_s26 }
 0xa13   : > { %1654 = vrot.lane.b32.xlu0 %v3465_v11, %s3151_s26 }
 0xa31   : > { %1845 = vmax.xlane.f32.xlu1 %v1844_v52 }
 0xa32   : > { %1848 = vmax.xlane.f32.xlu0 %v1847_v53  ;;  %v1544_v53 = vadd.f32 %v3516_v40, %v3548_v15 }
 0xa36   : > { %1851 = vmax.xlane.f32.xlu0 %v1850_v54 }
 0xa81   : > { %v1637_v55 = vpop.xlane.xlu0 %1636 }
 0xa82   : > { %3013 = vrcp.f32 %v1637_v55  ;;  %v1536_v55 = vadd.f32 %v3519_v41, %v3550_v17 }
 0xa85   : > { %v1643_v56 = vpop.xlane.xlu1 %1642 }
 0xa86   : > { %v1640_v57 = vpop.xlane.xlu0 %1639  ;;  %3015 = vrcp.f32 %v1643_v56 }
 0xa87   : > { %3017 = vrcp.f32 %v1640_v57 }
 0xa89   : > { %v1653_v60 = vpop.permute.xlu1 %1652 }
 0xa8a   : > { %v1655_v58 = vpop.permute.xlu0 %1654 }
 0xa8b   : > { %v1664_v59 = vand.u32 %v1655_v58, %v3492_v49 }
 0xa8d   : > { %2803 = vmatprep.subr.bf16.mxu0 %v1664_v59 }
 0xa8e   : > { %2804 = vmatpush3.bf16.msra.mxu0 %v1664_v59 }
 0xa8f   : > { %2805 = vmatprep.subr.bf16.mxu0 %v1653_v60  ;;  %v3014_v61 = vpop.eup %3013 }
 0xa90   : > { %v1647_v1 = vmul.f32 %v3014_v61, %v3008_v44 }
 0xa92   : > { %2806 = vmatpush3.bf16.msra.mxu0 %v1653_v60 }
 0xa93   : > { %v3016_v62 = vpop.eup %3015  ;;  %2875 = vmatprep.subr.msk.bf16.mxu0 %vm1212_vm9, %v1094_v28 }
 0xa94   : > { %v3018_v63 = vpop.eup %3017  ;;  %v1649_v0 = vmul.f32 %v3016_v62, %v3010_v46 }
 0xa95   : > { %v1648_v2 = vmul.f32 %v3018_v63, %v3012_v47 }
 0xa96   : > { %v1651_v3 = vpack.c.bf16 %v1649_v0, %v1649_v0 }
 0xa97   : > { %v1650_v4 = vpack.c.bf16 %v1648_v2, %v1647_v1 }
 0xa99   : > { %2807 = vmatprep.mubr.msk.bf16.mxu0 %vm1163_vm6, %v1650_v4 }
 0xa9a   : > { %2808 = vmatmul.mubr.msk.bf16.vlgmr.msra.gmra.mxu0 %vm1163_vm6, %v1651_v3 }
 0xa9b   : > { %2812 = vmatpush3.bf16.msra.mxu0 %v1723_v29 }
 0xaba   : > { %v1846_v6 = vpop.xlane.xlu1 %1845 }
 0xabb   : > { %v1849_v5 = vpop.xlane.xlu0 %1848  ;;  %v1853_v9 = vsub.f32 %v3559_v31, %v1846_v6  ;;  %v2636_v6 = vld [vmem:[%s3801_s18] ss:$0 sm:$0xff]  ;;  %s3805_s18 = sld [smem:[#allocation25_spill]] (!%p2651_p1) }
 0xabc   : > { %v1854_v7 = vsub.f32 %v1833_v51, %v1849_v5  ;;  %v1095_v51 = vld [vmem:[%s3363_s23 + $0xc] sm:$0xf] }
 0xabd   : > { %v1856_v13 = vmul.f32 1.442695, %v1853_v9  ;;  %v1950_v52 = vsel %vm1212_vm9, %v1095_v51, 0 }
 0xabe   : > { %v1858_v8 = vmul.f32 1.442695, %v1854_v7 }
 0xabf   : > { %v1852_v10 = vpop.xlane.xlu0 %1851 }
 0xac0   : > { %3019 = vpow2.f32 %v1858_v8  ;;  %v1855_v12 = vsub.f32 %v3557_v30, %v1852_v10  ;;  %v1538_v30 = vpop.f32.mrf.mxu0 }
 0xac1   : > { %v1539_v60 = vadd.f32 %v1538_v30, %v3552_v19 }
 0xac2   : > { %v1860_v14 = vmul.f32 1.442695, %v1855_v12 }
 0xac4   : > { %3021 = vpow2.f32 %v1860_v14 }
 0xac5   : > { %3023 = vpow2.f32 %v1856_v13 }
 0xacd   : > { %v3020_v18 = vpop.eup %3019 }
 0xace   : > { %v1865_v20 = vsel %vm1163_vm6, %v3020_v18, 0.0 }
 0xacf   : > { %1866 = vadd.xlane.f32.xlu0 %v1865_v20 }
 0xad1   : > { %v3022_v21 = vpop.eup %3021 }
 0xad2   : > { %v1868_v22 = vsel %vm1170_vm7, %v3022_v21, 0.0  ;;  %v3024_v26 = vpop.eup %3023 }
 0xad3   : > { %1869 = vadd.xlane.f32.xlu1 %v1868_v22  ;;  %v1862_v27 = vsel %vm1163_vm6, %v3024_v26, 0.0 }
 0xad7   : > { %1863 = vadd.xlane.f32.xlu1 %v1862_v27 }
 0xae5   : > { %1881 = vrot.lane.b32.xlu0 %v3465_v11, %s3152_s2 }
 0xae8   : > { %1879 = vrot.lane.b32.xlu1 %v3468_v16, %s3152_s2 }
 0xb58   : > { %v1867_v31 = vpop.xlane.xlu0 %1866 }
 0xb5a   : > { %v2809_v32 = vpop.f32.mrf.mxu0 }
 0xb5b   : > { %v1715_v43 = vpack.c.bf16 %v2809_v32, %v2809_v32 }
 0xb5c   : > { %v1882_v33 = vpop.permute.xlu0 %1881  ;;  %v1700_v34 = vpop.f32.mrf.mxu0 }
 0xb5d   : > { %v1891_v35 = vand.u32 %v1882_v33, %v3492_v49  ;;  %v1870_v36 = vpop.xlane.xlu1 %1869 }
 0xb5e   : > { %v2810_v37 = vpop.f32.mrf.mxu0  ;;  %3025 = vrcp.f32 %v1870_v36 }
 0xb5f   : > { %2825 = vmatprep.subr.bf16.mxu0 %v1891_v35  ;;  %3027 = vrcp.f32 %v1867_v31  ;;  %v2971_v37 = vld [vmem:[%s3380_s25 + $0x8] sm:$0xff]  }
 0xb60   : > { %v1703_v38 = vpop.f32.mrf.mxu0  ;;  %2839 = vmatprep.subr.bf16.mxu1 %v2971_v37 }
 0xb61   : > { %v1714_v39 = vpack.c.bf16 %v1703_v38, %v1700_v34  ;;  %v1864_v42 = vpop.xlane.xlu1 %1863  ;;  %v2972_v38 = vld [vmem:[%s3380_s25] sm:$0xff]   ;;  %2840 = vmatpush3.bf16.msra.mxu1 %v2971_v37 }
 0xb62   : > { %3029 = vrcp.f32 %v1864_v42  ;;  %2841 = vmatprep.subr.bf16.mxu1 %v2972_v38 }
 0xb63   : > { %2813 = vmatprep.mubr.msk.bf16.mxu0 %vm1102_vm5, %v1714_v39 }
 0xb64   : > { %2814 = vmatmul.mubr.msk.bf16.vlgmr.msra.gmra.mxu0 %vm1102_vm5, %v1715_v43 }
 0xb65   : > { %2826 = vmatpush3.bf16.msra.mxu0 %v1891_v35  ;;  %v1880_v11 = vpop.permute.xlu1 %1879  ;;  %2842 = vmatpush3.bf16.msra.mxu1 %v2972_v38 }
 0xb66   : > { %2827 = vmatprep.subr.bf16.mxu0 %v1880_v11 }
 0xb69   : > { %2828 = vmatpush3.bf16.msra.mxu0 %v1880_v11 }
 0xb6a   : > { %2878 = vmatprep.subr.msk.bf16.mxu0 %vm1212_vm9, %v1095_v51 }
 0xb6b   : > { %v3026_v16 = vpop.eup %3025 }
 0xb6c   : > { %v3028_v49 = vpop.eup %3027  ;;  %v1876_v45 = vmul.f32 %v3026_v16, %v3022_v21 }
 0xb6d   : > { %v1875_v47 = vmul.f32 %v3028_v49, %v3020_v18 }
 0xb6e   : > { %v1878_v50 = vpack.c.bf16 %v1876_v45, %v1876_v45 }
 0xb6f   : > { %v3030_v44 = vpop.eup %3029 }
 0xb70   : > { %v1874_v46 = vmul.f32 %v3030_v44, %v3024_v26 }
 0xb72   : > { %v1877_v48 = vpack.c.bf16 %v1875_v47, %v1874_v46 }
 0xb74   : > { %2829 = vmatprep.mubr.msk.bf16.mxu0 %vm1163_vm6, %v1877_v48 }
 0xb75   : > { %2830 = vmatmul.mubr.msk.bf16.vlgmr.msra.gmra.mxu0 %vm1163_vm6, %v1878_v50  ;;  %v2637_v50 = vld [vmem:[%s3802_s6] ss:$0 sm:$0xff]  ;;  %s3806_s6 = sld [smem:[#allocation26_spill]] (!%p2651_p1) }
 0xb76   : > { %2834 = vmatpush3.bf16.msra.mxu0 %v1950_v52 }
 0xc24   : > { %v2815_v54 = vpop.f32.mrf.mxu0 }
 0xc25   : > { %v1775_v56 = vadd.f32 %v2815_v54, %v1544_v53  ;;  %v2638_v54 = vld [vmem:[%s814_s28] ss:$0 sm:$0xff]  ;;  %s3807_s28 = sld [smem:[#allocation28_spill]] (!%p2651_p1) }
 0xc26   : > { %v1759_v57 = vpop.f32.mrf.mxu0 }
 0xc27   : > { %v1773_v58 = vadd.f32 %v1759_v57, %v1536_v55 }
 0xc28   : > { %v2816_v59 = vpop.f32.mrf.mxu0 }
 0xc2a   : > { %v1762_v61 = vpop.f32.mrf.mxu0 }
 0xc2b   : > { %v1774_v62 = vadd.f32 %v1762_v61, %v1539_v60 }
 0xc35   : > { %v2831_v63 = vpop.f32.mrf.mxu0 }
 0xc36   : > { %v1942_v4 = vpack.c.bf16 %v2831_v63, %v2831_v63 }
 0xc37   : > { %v1927_v0 = vpop.f32.mrf.mxu0 }
 0xc39   : > { %v2832_v1 = vpop.f32.mrf.mxu0 }
 0xc3a   : > { %v2974_v1 = vld [vmem:[%s3394_s21 + $0x10] sm:$0xff]  }
 0xc3b   : > { %v1930_v2 = vpop.f32.mrf.mxu0 }
 0xc3c   : > { %v1941_v3 = vpack.c.bf16 %v1930_v2, %v1927_v0  ;;  %v2973_v0 = vld [vmem:[%s3394_s21 + $0x18] sm:$0xff]   ;;  %v2975_v2 = vld [vmem:[%s3394_s21 + $0x8] sm:$0xff]  }
 0xc3d   : > { %2847 = vmatprep.subr.bf16.mxu0 %v2973_v0 }
 0xc3e   : > { %2835 = vmatprep.mubr.msk.bf16.mxu0 %vm1102_vm5, %v1941_v3  ;;  %v2976_v3 = vld [vmem:[%s3394_s21] sm:$0xff]  }
 0xc3f   : > { %2836 = vmatmul.mubr.msk.bf16.vlgmr.msra.gmra.mxu0 %vm1102_vm5, %v1942_v4  ;;  %v2639_v4 = vld [vmem:[%s822_s29] ss:$0 sm:$0xff] }
 0xc40   : > { %2848 = vmatpush3.bf16.msra.mxu0 %v2973_v0 }
 0xc41   : > { %2849 = vmatprep.subr.bf16.mxu0 %v2974_v1 }
 0xc44   : > { %2850 = vmatpush3.bf16.msra.mxu0 %v2974_v1 }
 0xc45   : > { %2851 = vmatprep.subr.bf16.mxu0 %v2975_v2 }
 0xc48   : > { %2852 = vmatpush3.bf16.msra.mxu0 %v2975_v2 }
 0xc49   : > { %2853 = vmatprep.subr.bf16.mxu0 %v2976_v3 }
 0xc4c   : > { %2854 = vmatpush3.bf16.msra.mxu0 %v2976_v3 }
 0xcff   : > { %v2837_v40 = vpop.f32.mrf.mxu0 }
 0xd00   : > { %v2002_v5 = vadd.f32 %v2837_v40, %v1775_v56 }
 0xd01   : > { %v1986_v41 = vpop.f32.mrf.mxu0 }
 0xd02   : > { %v2000_v15 = vadd.f32 %v1986_v41, %v1773_v58  ;;  %v2005_v10 = vadd.f32 %v2002_v5, %v3430_v24 }
 0xd03   : > { %v2838_v17 = vpop.f32.mrf.mxu0 }
 0xd04   : > { %v2003_v19 = vadd.f32 %v2000_v15, %v3428_v23  ;;  %v3613_v23 = vadd.f32 %v2636_v6, %v2005_v10 }
 0xd05   : > { %v1989_v7 = vpop.f32.mrf.mxu0 }
 0xd06   : > { %v3605_v8 = vadd.f32 %v2636_v6, %v2003_v19  ;;  %v2001_v9 = vadd.f32 %v1989_v7, %v1774_v62  ;;  %v2024_v20 = vsel %vm958_vm4, %v3613_v23, 0.0 }
 0xd08   : > { %v2004_v12 = vadd.f32 %v2001_v9, %v3432_v25  ;;  %v2018_v13 = vsel %vm951_vm3, %v3605_v8, 0.0 }
 0xd09   : > { %2019 = vadd.xlane.f32.xlu1 %v2018_v13 }
 0xd0a   : > { %v3611_v14 = vadd.f32 %v2636_v6, %v2004_v12 }
 0xd0c   : > { %v2021_v18 = vsel %vm951_vm3, %v3611_v14, 0.0 }
 0xd0d   : > { %2022 = vadd.xlane.f32.xlu0 %v2021_v18 }
 0xd11   : > { %2025 = vadd.xlane.f32.xlu0 %v2024_v20 }
 0xd92   : > { %v2020_v21 = vpop.xlane.xlu1 %2019 }
 0xd93   : > { %v2027_v24 = vmul.f32 0.03125, %v2020_v21 }
 0xd95   : > { %v2030_v25 = vsub.f32 %v3605_v8, %v2027_v24 }
 0xd96   : > { %v2023_v22 = vpop.xlane.xlu0 %2022 }
 0xd97   : > { %v2028_v26 = vmul.f32 0.03125, %v2023_v22  ;;  %v2033_v27 = vmul.f32 %v2030_v25, %v2030_v25 }
 0xd99   : > { %v2031_v28 = vsub.f32 %v3611_v14, %v2028_v26  ;;  %v2036_v29 = vsel %vm951_vm3, %v2033_v27, 0.0 }
 0xd9a   : > { %2037 = vadd.xlane.f32.xlu1 %v2036_v29  ;;  %v2026_v30 = vpop.xlane.xlu0 %2025 }
 0xd9b   : > { %v2029_v31 = vmul.f32 0.03125, %v2026_v30  ;;  %v2034_v32 = vmul.f32 %v2031_v28, %v2031_v28 }
 0xd9d   : > { %v2032_v33 = vsub.f32 %v3613_v23, %v2029_v31  ;;  %v2039_v34 = vsel %vm951_vm3, %v2034_v32, 0.0 }
 0xd9e   : > { %2040 = vadd.xlane.f32.xlu0 %v2039_v34 }
 0xd9f   : > { %v2035_v35 = vmul.f32 %v2032_v33, %v2032_v33 }
 0xda1   : > { %v2042_v36 = vsel %vm958_vm4, %v2035_v35, 0.0 }
 0xda2   : > { %2043 = vadd.xlane.f32.xlu1 %v2042_v36 }
 0xe23   : > { %v2038_v39 = vpop.xlane.xlu1 %2037 }
 0xe24   : > { %v2045_v42 = vmul.f32 0.03125, %v2038_v39 }
 0xe26   : > { %v2048_v43 = vadd.f32 1e-12, %v2045_v42 }
 0xe27   : > { %v2041_v11 = vpop.xlane.xlu0 %2040 }
 0xe28   : > { %3031 = vrsqrt.f32 %v2048_v43  ;;  %v2046_v16 = vmul.f32 0.03125, %v2041_v11 }
 0xe2a   : > { %v2049_v49 = vadd.f32 1e-12, %v2046_v16 }
 0xe2b   : > { %v2044_v44 = vpop.xlane.xlu1 %2043 }
 0xe2c   : > { %3033 = vrsqrt.f32 %v2049_v49  ;;  %v2047_v45 = vmul.f32 0.03125, %v2044_v44  ;;  %v2644_v49 = vld [vmem:[%s830_s20] ss:$0 sm:$0xff] }
 0xe2e   : > { %v2050_v46 = vadd.f32 1e-12, %v2047_v45 }
 0xe30   : > { %3035 = vrsqrt.f32 %v2050_v46 }
 0xe35   : > { %v3032_v47 = vpop.eup %3031 }
 0xe36   : > { %v2054_v48 = vmul.f32 %v3032_v47, %v2030_v25 }
 0xe38   : > { %v2063_v53 = vmul.f32 %v2637_v50, %v2054_v48 }
 0xe39   : > { %v3034_v51 = vpop.eup %3033 }
 0xe3a   : > { %v2055_v52 = vmul.f32 %v3034_v51, %v2031_v28  ;;  %v2072_v58 = vadd.f32 %v2638_v54, %v2063_v53 }
 0xe3c   : > { %v2064_v55 = vmul.f32 %v2637_v50, %v2055_v52 }
 0xe3d   : > { %v3036_v56 = vpop.eup %3035 }
 0xe3e   : > { %v2056_v57 = vmul.f32 %v3036_v56, %v2032_v33  ;;  %v2073_v59 = vadd.f32 %v2638_v54, %v2064_v55 }
 0xe40   : > { %v2075_v60 = vpack.c.bf16 %v2073_v59, %v2072_v58  ;;  %v2065_v61 = vmul.f32 %v2637_v50, %v2056_v57 }
 0xe42   : > { %2843 = vmatprep.mubr.msk.bf16.mxu1 %vm951_vm3, %v2075_v60  ;;  %v2074_v62 = vadd.f32 %v2638_v54, %v2065_v61 }
 0xe44   : > { %v2076_v63 = vpack.c.bf16 %v2074_v62, %v2074_v62 }
 0xe46   : > { %2844 = vmatmul.mubr.msk.bf16.vlgmr.msra.gmra.mxu1 %vm951_vm3, %v2076_v63 }
 0xf06   : > { %v2845_v40 = vpop.f32.mrf.mxu1 }
 0xf07   : > { %v2149_v41 = vadd.f32 %v2845_v40, %v2639_v4 }
 0xf08   : > { %v2140_v15 = vpop.f32.mrf.mxu1 }
 0xf09   : > { %v2159_v17 = vmul.f32 0.044715, %v2149_v41  ;;  %v2141_v5 = vadd.f32 %v2639_v4, %v2140_v15  ;;  %v2156_v35 = vmul.f32 0.5, %v2149_v41 }
 0xf0a   : > { %v2846_v19 = vpop.f32.mrf.mxu1 }
 0xf0b   : > { %v2162_v6 = vmul.f32 %v2159_v17, %v2149_v41  ;;  %v2157_v7 = vmul.f32 0.044715, %v2141_v5  ;;  %v2154_v36 = vmul.f32 0.5, %v2141_v5 }
 0xf0c   : > { %v2143_v9 = vpop.f32.mrf.mxu1 }
 0xf0d   : > { %v2165_v10 = vmul.f32 %v2162_v6, %v2149_v41  ;;  %v2160_v12 = vmul.f32 %v2157_v7, %v2141_v5  ;;  %v2144_v13 = vadd.f32 %v2639_v4, %v2143_v9 }
 0xf0f   : > { %v2168_v18 = vadd.f32 %v2165_v10, %v2149_v41  ;;  %v2163_v20 = vmul.f32 %v2160_v12, %v2141_v5  ;;  %v2158_v21 = vmul.f32 0.044715, %v2144_v13  ;;  %v2155_v37 = vmul.f32 0.5, %v2144_v13 }
 0xf11   : > { %v2171_v24 = vmul.f32 0.7978846, %v2168_v18  ;;  %v2166_v25 = vadd.f32 %v2163_v20, %v2141_v5  ;;  %v2161_v22 = vmul.f32 %v2158_v21, %v2144_v13 }
 0xf13   : > { %v2169_v26 = vmul.f32 0.7978846, %v2166_v25  ;;  %v2164_v27 = vmul.f32 %v2161_v22, %v2144_v13  ;;  %3037 = vtanh.f32 %v2171_v24 }
 0xf15   : > { %3039 = vtanh.f32 %v2169_v26  ;;  %v2167_v28 = vadd.f32 %v2164_v27, %v2144_v13 }
 0xf17   : > { %v2170_v29 = vmul.f32 0.7978846, %v2167_v28 }
 0xf19   : > { %3041 = vtanh.f32 %v2170_v29 }
 0xf20   : > { %v3038_v30 = vpop.eup %3037 }
 0xf21   : > { %v2177_v32 = vadd.f32 1.0, %v3038_v30 }
 0xf22   : > { %v3040_v31 = vpop.eup %3039 }
 0xf23   : > { %v2175_v33 = vadd.f32 1.0, %v3040_v31  ;;  %v2180_v39 = vmul.f32 %v2177_v32, %v2156_v35 }
 0xf25   : > { %v2178_v42 = vmul.f32 %v2175_v33, %v2154_v36  ;;  %v2182_v16 = vpack.c.bf16 %v2180_v39, %v2180_v39 }
 0xf26   : > { %v3042_v34 = vpop.eup %3041 }
 0xf27   : > { %v2176_v38 = vadd.f32 1.0, %v3042_v34 }
 0xf29   : > { %v2179_v43 = vmul.f32 %v2176_v38, %v2155_v37 }
 0xf2b   : > { %v2181_v11 = vpack.c.bf16 %v2179_v43, %v2178_v42 }
 0xf2d   : > { %2855 = vmatprep.mubr.msk.bf16.mxu0 %vm2222_vm10, %v2181_v11 }
 0xf2e   : > { %2856 = vmatmul.mubr.msk.bf16.vlgmr.msra.gmra.mxu0 %vm2222_vm10, %v2182_v16 }
 0xfee   : > { %v2857_v44 = vpop.f32.mrf.mxu0 }
 0xfef   : > { %v2272_v45 = vadd.f32 %v2857_v44, %v2644_v49 }
 0xff0   : > { %v2263_v46 = vpop.f32.mrf.mxu0 }
 0xff1   : > { %v2279_v47 = vadd.f32 %v2272_v45, %v3613_v23  ;;  %v2264_v48 = vadd.f32 %v2644_v49, %v2263_v46 }
 0xff2   : > { %v2858_v50 = vpop.f32.mrf.mxu0 }
 0xff3   : > { %2282 = vst.msk [vmem:[#allocation2 + $0x10] sm:$0x7f] %vm958_vm4, %v2279_v47  ;;  %v2277_v51 = vadd.f32 %v2264_v48, %v3605_v8 }
 0xff4   : > { %v2266_v52 = vpop.f32.mrf.mxu0 }
 0xff5   : > { %2280 = vst.msk [vmem:[#allocation2] sm:$0xff] %vm951_vm3, %v2277_v51  ;;  %v2267_v53 = vadd.f32 %v2644_v49, %v2266_v52  ;;  %2286 = sbr.rel (%p2651_p1) target bundleno = 4606 (0x11fe), region = 108 }
 0xff7   : > { %v2278_v54 = vadd.f32 %v2267_v53, %v3611_v14 }
 0xff9   : > { %2281 = vst.msk [vmem:[#allocation2 + $0x8] sm:$0xff] %vm951_vm3, %v2278_v54 }
 0xffa   : > { %vm2289_vm11 = vcmask 254976   ;;  %v3043_v8 = vld [vmem:[%s3804_s8 + $0x8] sm:$0xff]   ;;  %v3153_v60 = vmov 0.0   ;;  %vm3154_vm12 = vmmov 0   ;;  %v3044_v14 = vld [vmem:[%s3804_s8] sm:$0xff]  }
 0xffb   : > { %v2290_v55 = vsel %vm2289_vm11, %v2277_v51, 0.0  ;;  %2859 = vmatprep.subr.bf16.mxu0 %v3153_v60  ;;  %2863 = vmatprep.mubr.msk.bf16.mxu0 %vm3154_vm12, %v3153_v60  ;;  %v2652_v1 = vld [vmem:[%s3805_s18] ss:$0 sm:$0xff] }
 0xffc   : > { %2291 = vadd.xlane.f32.xlu0 %v2290_v55  ;;  %2860 = vmatpush3.bf16.msra.mxu0 %v3043_v8  ;;  %v2653_v3 = vld [vmem:[%s3806_s6] ss:$0 sm:$0xff] }
 0xffd   : > { %2861 = vmatprep.subr.bf16.mxu0 %v3153_v60  ;;  %v2327_v19 = vld [vmem:[%s3807_s28] sm:$0x1] }
0x1000   : > { %2862 = vmatpush3.bf16.msra.mxu0 %v3044_v14 }
0x1085   : > { %v2292_v23 = vpop.xlane.xlu0 %2291 }
0x1086   : > { %v2293_v56 = vmul.f32 0.03125, %v2292_v23 }
0x1088   : > { %v2294_v57 = vsub.f32 %v2277_v51, %v2293_v56 }
0x108a   : > { %v2295_v58 = vmul.f32 %v2294_v57, %v2294_v57 }
0x108c   : > { %v2296_v59 = vsel %vm2289_vm11, %v2295_v58, 0.0 }
0x108d   : > { %2297 = vadd.xlane.f32.xlu0 %v2296_v59 }
0x1116   : > { %v2298_v61 = vpop.xlane.xlu0 %2297 }
0x1117   : > { %v2299_v62 = vmul.f32 0.03125, %v2298_v61 }
0x1119   : > { %v2300_v63 = vadd.f32 1e-12, %v2299_v62 }
0x111b   : > { %3045 = vrsqrt.f32 %v2300_v63 }
0x1128   : > { %v3046_v0 = vpop.eup %3045 }
0x1129   : > { %v2302_v2 = vmul.f32 %v3046_v0, %v2294_v57 }
0x112b   : > { %v2309_v4 = vmul.f32 %v2652_v1, %v2302_v2 }
0x112d   : > { %v2316_v40 = vadd.f32 %v2653_v3, %v2309_v4 }
0x112f   : > { %v2318_v41 = vrot.slane %v2316_v40, 1 }
0x1131   : > { %v2320_v15 = vadd.f32 %v2318_v41, %v2316_v40 }
0x1133   : > { %v2321_v17 = vmul.f32 0.5, %v2320_v15 }
0x1135   : > { %v2322_v5 = vpack.c.bf16 %v2321_v17, %v2321_v17 }
0x1137   : > { %2864 = vmatmul.mubr.msk.bf16.vlgmr.msra.gmra.mxu0 %vm951_vm3, %v2322_v5 }
0x11f7   : > { %v2377_v6 = vpop.f32.mrf.mxu0 }
0x11f8   : > { %v2378_v7 = vadd.f32 %v2377_v6, %v2327_v19 }
0x11f9   : > { %v2865_v9 = vpop.f32.mrf.mxu0 }
0x11fa   : > { %2383 = vst [vmem:[%s3398_s17] sm:$0x1] %v2378_v7 }
0x11fb   : > { %v2380_v10 = vpop.f32.mrf.mxu0 }
0x11fd   : > { %v2866_v12 = vpop.f32.mrf.mxu0 }
0x11fe PF: > { %s3808_s3 = sld [smem:[#allocation9_spill]]  ;;  %s2397_s2 = sshll.u32 %s3398_s17, 4  ;;  %s2398_s2 = int_to_ptr.vmem [resolvable:$true] %s2397_s2 }
0x11ff   : > { %s3810_s0 = sld [smem:[#allocation29_spill]]  ;;  %s3811_s23 = sand.u32 1, %s3115_s22  }
0x1200   : > { %s2385_s30 = scalar_lea.sflag [#allocation4], %s3811_s23  ;;  %s3047_s18 = scalar_lea.vmem %s2398_s2, 16 }
0x1201   : > { %p3048_p2 = scmp.ne.s32.totalorder %s2398_s2, %s3047_s18  ;;  %s3155_s25 = smov [#allocation3]  }
0x1202   : > { %s3051_s16 = sshll.u32 %s3155_s25, 4  ;;  %s3052_s16 = int_to_ptr.vmem [resolvable:$false] %s3051_s16 }
0x1203   : > { %p3049_p4 = pnand %p3048_p2, %p3310_p3  ;;  %s3053_s6 = scalar_lea.vmem %s3052_s16, 32 }
0x1204   : > { %s2657_s21 = sshll.u32 %s3808_s3, 4  ;;  %p3054_p6 = scmp.lt.s32.totalorder %s2398_s2, %s3052_s16 }
0x1205   : > { %s2395_s26 = scalar_lea.hbm %s3810_s0, %s2657_s21  ;;  %p3050_p5 = pneg %p3049_p4 }
0x1206   : > { %p3055_p7 = scmp.lt.s32.totalorder %s3053_s6, %s3047_s18 }
0x1208   : > { %p3056_p8 = por %p3055_p7, %p3054_p6 }
0x120a   : > { %p3057_p10 = pnand %p3056_p8, %p3050_p5 }
0x120c   : > { %3060 = shalt.err (!%p3057_p10)
}
0x120d   : > { %s3061_s19 = scalar_lea.hbm %s2395_s26, 16  ;;  %s3065_s28 = scalar_lea.hbm %s3810_s0, 32 }
0x120e   : > { %p3062_p11 = scmp.ne.s32.totalorder %s2395_s26, %s3061_s19  ;;  %p3066_p0 = scmp.lt.s32.totalorder %s2395_s26, %s3810_s0 }
0x120f   : > { %p3067_p1 = scmp.lt.s32.totalorder %s3065_s28, %s3061_s19 }
0x1210   : > { %p3063_p12 = pnand %p3062_p11, %p3310_p3 }
0x1211   : > { %p3068_p2 = por %p3067_p1, %p3066_p0 }
0x1212   : > { %p3064_p13 = pneg %p3063_p12 }
0x1214   : > { %p3069_p4 = pnand %p3068_p2, %p3064_p13 }
0x1216   : > { %3072 = shalt.err (!%p3069_p4)
}
0x1217   : > { %2880 = dma.vmem_to_hbm [thread:$0]  (%p3310_p3), %s2398_s2, 16, %s2395_s26, %s2385_s30  }
0x1218 PF: > { %s3812_s1 = sld [smem:[#allocation12_spill]] }
0x1219   : > { %s3813_s20 = sld [smem:[#allocation6_spill]] }
0x121e   : > { %p2886_p5 = scmp.ge.s32.totalorder %s3812_s1, 2 }
0x121f   : > { %s2409_s18 = sand.u32 1, %s3813_s20  }
0x1220   : > { %p2883_p6 = pnand %p2886_p5, %p3320_p9  ;;  %s2410_s25 = scalar_lea.sflag [#allocation4], %s2409_s18 }
0x1222   : > { %p2884_p7 = pneg %p2883_p6 }
0x1224   : > { %3106 = dma.done.wait (%p2884_p7), %s2410_s25, 16  }
0x1225   : > { %3108 = vsyncadd (%p2884_p7), %s2410_s25, 4294967280  ;;  %s33_s26 = sadd.s32 1, %s3812_s1   ;;  %s3815_s16 = sld [smem:[#allocation7_spill]] }
0x1226   : > { %p30_p8 = scmp.ge.s32.totalorder %s33_s26, 6   ;;  %s3816_s23 = sld [smem:[#allocation17_spill]] }
0x1227   : > { %s3817_s24 = sld [smem:[#allocation10_spill]]  ;;  %s3821_s1 = smov %s3115_s22 }
0x1228   : > { %s3818_s2 = sld [smem:[#allocation11_spill]]  ;;  %32 = sbr.rel (!%p30_p8) target bundleno = 18 (0x12), region = 179 }
0x1229   : > { %s3819_s25 = sld [smem:[#allocation13_spill]] }
0x122a   : > { %s3820_s3 = sld [smem:[#allocation15_spill]] }
0x122b   : > { %s3822_s22 = smov %s3815_s16 }
0x122d   :  { %2414 = vsyncpa [#allocation4], 1 }
0x122e   :  { %2416 = vsyncpa [#allocation4 + $0x1], 1 }

</bundles_post_ra>
